<compile_context>
chip_gen: v6e
topology: v6e:2x2x1
jax: 0.10.0
libtpu: 0.0.40
codegen_flags: <defaults>
</compile_context>

<pallas_src>
import jax
import jax.numpy as jnp
from jax import lax
from jax.experimental import pallas as pl
from jax.experimental.pallas import tpu as pltpu


# ------------------------------ Pallas kernel ------------------------------ #

def _group_kernel(xyz_ref, center_ref, neigh_ref, w_ref):
    """Fused FPS + kNN + gather for Bt batch elements.

    xyz_ref    : (Bt, 3, N)     lane-dense input points
    center_ref : (Bt, 3, G)     output FPS centers (lane-dense)
    neigh_ref  : (Bt, 3, M*G)   output neighborhoods, column j = k*G + g
    w_ref      : (M, Bt, G, N)  VMEM scratch of stacked one-hot selections
    """
    Bt = xyz_ref.shape[0]
    N = xyz_ref.shape[2]
    G = center_ref.shape[2]
    M = w_ref.shape[0]
    MG = M * G
    f32 = jnp.float32

    xyz = xyz_ref[...].astype(f32)                           # (Bt, 3, N)

    # ----------------------- farthest point sampling ------------------------
    lane_n = lax.broadcasted_iota(jnp.int32, (Bt, 1, N), 2)
    iota_g = lax.broadcasted_iota(jnp.int32, (Bt, 3, G), 2)

    def fps_body(i, carry):
        dist, farthest, ctr = carry                          # (Bt,1,N) (Bt,1,1) (Bt,3,G)
        onehot = (lane_n == farthest).astype(f32)            # (Bt,1,N)
        # exact point extraction: one-hot * xyz summed over lanes
        pt = jnp.sum(onehot * xyz, axis=2, keepdims=True)    # (Bt,3,1)
        ctr = jnp.where(iota_g == i, pt, ctr)                # write column i
        diff = xyz - pt
        d = jnp.sum(diff * diff, axis=1, keepdims=True)      # (Bt,1,N)
        dist = jnp.minimum(dist, d)
        mx = jnp.max(dist, axis=2, keepdims=True)            # (Bt,1,1)
        cand = jnp.where(dist == mx, lane_n, N)              # first index of max
        farthest = jnp.min(cand, axis=2, keepdims=True)      # (Bt,1,1) int32
        return dist, farthest, ctr

    carry0 = (jnp.full((Bt, 1, N), 1e10, f32),
              jnp.zeros((Bt, 1, 1), jnp.int32),
              jnp.zeros((Bt, 3, G), f32))
    _, _, ctr = lax.fori_loop(0, G, fps_body, carry0)

    center_ref[...] = ctr.astype(center_ref.dtype)           # one dense store

    # ------------------ kNN ordering keys: x2 - 2 * <c, x> ------------------
    # (|c|^2 is constant per row -> irrelevant for the per-row argmin.)
    x2_all = jnp.sum(xyz * xyz, axis=1, keepdims=True)       # (Bt, 1, N)
    d_rows = []
    for b in range(Bt):                                      # static unroll
        cross = lax.dot_general(                              # (3,G)^T @ (3,N) -> (G,N)
            ctr[b], xyz[b], (((0,), (0,)), ((), ())),
            preferred_element_type=f32,
            precision=lax.Precision.HIGHEST)
        d_rows.append(x2_all[b] - 2.0 * cross)                # (G, N)
    dmat = jnp.stack(d_rows, axis=0)                          # (Bt, G, N)

    # ---------- iterative k-nearest selection (argmin + one-hot only) -------
    col_n = lax.broadcasted_iota(jnp.int32, (Bt, G, N), 2)

    def sel_body(k, dcur):
        mn = jnp.min(dcur, axis=2, keepdims=True)             # (Bt,G,1)
        cand = jnp.where(dcur == mn, col_n, N)
        idx = jnp.min(cand, axis=2, keepdims=True)            # first index of min
        sel = col_n == idx                                    # (Bt,G,N) one-hot
        w_ref[k] = sel.astype(f32)                            # stack, no matmul here
        return jnp.where(sel, jnp.float32(jnp.inf), dcur)

    lax.fori_loop(0, M, sel_body, dmat)

    # ------------- hoisted gather matmul + center subtraction ---------------
    # tiling matrix T[g, j] = (j % G == g): ctr_b @ T tiles centers to (3, M*G)
    tile_T = (lax.broadcasted_iota(jnp.int32, (G, MG), 0)
              == lax.broadcasted_iota(jnp.int32, (G, MG), 1) % G).astype(f32)

    for b in range(Bt):                                      # static unroll
        w_b = w_ref[:, b].reshape(MG, N)                     # (M*G, N) one-hots
        pts = lax.dot_general(                                # (3,N) x (MG,N)^T -> (3,MG)
            xyz[b], w_b, (((1,), (1,)), ((), ())),
            preferred_element_type=f32,
            precision=lax.Precision.HIGHEST)                  # exact one-hot gather
        ctr_t = lax.dot_general(                              # (3,G) @ (G,MG) -> (3,MG)
            ctr[b], tile_T, (((1,), (0,)), ((), ())),
            preferred_element_type=f32,
            precision=lax.Precision.HIGHEST)                  # exact tiling
        neigh_ref[b] = (pts - ctr_t).astype(neigh_ref.dtype)  # lane-dense store


# ------------------------------ host wrapper -------------------------------- #

def group_forward(xyz, num_group, group_size):
    """xyz: (B, N, 3) -> (neighborhood (B, G, M, 3), center (B, G, 3))."""
    B, N, C = xyz.shape
    assert C == 3
    G, M = num_group, group_size
    assert M <= N, "group_size must not exceed the number of points"
    assert G <= N, "num_group must not exceed the number of points"

    # Batch tile: process Bt batch elements in lockstep per grid step to
    # amortize the serialized FPS / selection chains.
    Bt = 1
    for cand in (8, 4, 2):
        if B % cand == 0:
            Bt = cand
            break

    xyz_cn = jnp.transpose(xyz, (0, 2, 1))                   # (B, 3, N) lane-dense

    center_cn, neigh_cn = pl.pallas_call(
        _group_kernel,
        out_shape=(jax.ShapeDtypeStruct((B, 3, G), xyz.dtype),
                   jax.ShapeDtypeStruct((B, 3, M * G), xyz.dtype)),
        grid=(B // Bt,),
        in_specs=[pl.BlockSpec((Bt, 3, N), lambda i: (i, 0, 0))],
        out_specs=(pl.BlockSpec((Bt, 3, G), lambda i: (i, 0, 0)),
                   pl.BlockSpec((Bt, 3, M * G), lambda i: (i, 0, 0))),
        scratch_shapes=[pltpu.VMEM((M, Bt, G, N), jnp.float32)],
        compiler_params=pltpu.CompilerParams(
            dimension_semantics=("parallel",)),
    )(xyz_cn)

    center = jnp.transpose(center_cn, (0, 2, 1))             # (B, G, 3)
    neighborhood = jnp.transpose(neigh_cn.reshape(B, 3, M, G), (0, 3, 2, 1))
    return neighborhood, center


# -------------------------------- module ------------------------------------ #

class Group:
    def __init__(self, num_group, group_size):
        self.num_group = num_group
        self.group_size = group_size

    def __call__(self, xyz):
        return group_forward(xyz, self.num_group, self.group_size)

    # pure-JAX reference for verification
    def reference(self, xyz):
        B, N, _ = xyz.shape
        G, M = self.num_group, self.group_size

        def fps_single(pts):
            def body(i, state):
                dists, farthest, centers = state
                pt = pts[farthest]
                centers = centers.at[i].set(pt)
                d = jnp.sum((pts - pt) ** 2, axis=1)
                dists = jnp.minimum(dists, d)
                return dists, jnp.argmax(dists).astype(jnp.int32), centers

            init = (jnp.full((N,), 1e10, jnp.float32), jnp.int32(0),
                    jnp.zeros((G, 3), pts.dtype))
            _, _, centers = lax.fori_loop(0, G, body, init)
            return centers

        center = jax.vmap(fps_single)(xyz)                              # (B, G, 3)
        cross = jnp.einsum('bgc,bnc->bgn', center, xyz,
                           precision=lax.Precision.HIGHEST)             # (B, G, N)
        d = (jnp.sum(center ** 2, -1)[:, :, None]
             + jnp.sum(xyz ** 2, -1)[:, None, :]
             - 2.0 * cross)
        _, idx = lax.top_k(-d, M)                                       # (B, G, M)
        neigh = jax.vmap(lambda p, i: p[i])(xyz, idx)                   # (B, G, M, 3)
        neigh = neigh - center[:, :, None, :]
        return neigh, center


# --------------------------------- main -------------------------------------- #

if __name__ == "__main__":
    key = jax.random.PRNGKey(0)

    B, N = 2, 128
    num_group, group_size = 16, 8

    xyz = jax.random.normal(key, (B, N, 3), jnp.float32)

    grp = Group(num_group=num_group, group_size=group_size)
    neighborhood, center = grp(xyz)
    jax.block_until_ready((neighborhood, center))

    assert neighborhood.shape == (B, num_group, group_size, 3), neighborhood.shape
    assert center.shape == (B, num_group, 3), center.shape

    neigh_ref, center_ref = grp.reference(xyz)
    assert jnp.allclose(center, center_ref, atol=1e-3, rtol=1e-3)
    assert jnp.allclose(neighborhood, neigh_ref, atol=1e-3, rtol=1e-3)

    print("KERNEL_OK")
</pallas_src>

<mosaic_0001>
module attributes {stable_mosaic.version = 11 : i64} {
  func.func @_group_kernel(%arg0: i32, %arg1: memref<2x3x128xf32, #tpu.memory_space<vmem>>, %arg2: memref<2x3x16xf32, #tpu.memory_space<vmem>>, %arg3: memref<2x3x128xf32, #tpu.memory_space<vmem>>, %arg4: memref<8x2x16x128xf32, #tpu.memory_space<vmem>>) attributes {dimension_semantics = [#tpu.dimension_semantics<parallel>], iteration_bounds = array<i64: 1>, scalar_prefetch = 0 : i64, scratch_operands = 1 : i64, tpu.core_type = #tpu.core_type<tc>, window_params = [{transform_indices = @transform_0, window_bounds = array<i64: 2, 3, 128>}, {transform_indices = @transform_1, window_bounds = array<i64: 2, 3, 16>}, {transform_indices = @transform_2, window_bounds = array<i64: 2, 3, 128>}]} {
    %c0 = arith.constant 0 : index
    %c0_0 = arith.constant 0 : index
    %c0_1 = arith.constant 0 : index
    %0 = vector.load %arg1[%c0, %c0_0, %c0_1] : memref<2x3x128xf32, #tpu.memory_space<vmem>>, vector<2x3x128xf32>
    %1 = tpu.iota {dimensions = array<i32: 2>} : vector<2x1x128xi32>
    %2 = tpu.iota {dimensions = array<i32: 2>} : vector<2x3x16xi32>
    %cst = arith.constant 1.000000e+10 : f32
    %3 = vector.broadcast %cst : f32 to vector<2x1x128xf32>
    %c0_i32 = arith.constant 0 : i32
    %4 = vector.broadcast %c0_i32 : i32 to vector<2x1x1xi32>
    %cst_2 = arith.constant 0.000000e+00 : f32
    %5 = vector.broadcast %cst_2 : f32 to vector<2x3x16xf32>
    %c0_i32_3 = arith.constant 0 : i32
    %c16_i32 = arith.constant 16 : i32
    %6 = arith.addi %c0_i32_3, %c16_i32 : i32
    %c1_i32 = arith.constant 1 : i32
    %7:3 = scf.for %arg5 = %c0_i32_3 to %6 step %c1_i32 iter_args(%arg6 = %3, %arg7 = %4, %arg8 = %5) -> (vector<2x1x128xf32>, vector<2x1x1xi32>, vector<2x3x16xf32>)  : i32 {
      %87 = vector.broadcast %arg7 : vector<2x1x1xi32> to vector<2x1x128xi32>
      %88 = arith.cmpi eq, %1, %87 : vector<2x1x128xi32>
      %89 = arith.extui %88 : vector<2x1x128xi1> to vector<2x1x128xi32>
      %90 = arith.sitofp %89 : vector<2x1x128xi32> to vector<2x1x128xf32>
      %91 = vector.broadcast %90 : vector<2x1x128xf32> to vector<2x3x128xf32>
      %92 = arith.mulf %91, %0 : vector<2x3x128xf32>
      %cst_39 = arith.constant dense<0.000000e+00> : vector<2x3xf32>
      %93 = vector.multi_reduction <add>, %92, %cst_39 [2] : vector<2x3x128xf32> to vector<2x3xf32>
      %94 = vector.shape_cast %93 : vector<2x3xf32> to vector<2x3x1xf32>
      %95 = vector.broadcast %arg5 : i32 to vector<2x3x16xi32>
      %96 = arith.cmpi eq, %2, %95 : vector<2x3x16xi32>
      %97 = vector.shape_cast %94 : vector<2x3x1xf32> to vector<2x3x1xf32>
      %98 = vector.broadcast %97 : vector<2x3x1xf32> to vector<2x3x16xf32>
      %99 = arith.select %96, %98, %arg8 : vector<2x3x16xi1>, vector<2x3x16xf32>
      %100 = vector.broadcast %94 : vector<2x3x1xf32> to vector<2x3x128xf32>
      %101 = arith.subf %0, %100 : vector<2x3x128xf32>
      %102 = arith.mulf %101, %101 : vector<2x3x128xf32>
      %cst_40 = arith.constant dense<0.000000e+00> : vector<2x128xf32>
      %103 = vector.multi_reduction <add>, %102, %cst_40 [1] : vector<2x3x128xf32> to vector<2x128xf32>
      %104 = vector.shape_cast %103 : vector<2x128xf32> to vector<2x1x128xf32>
      %105 = arith.minimumf %arg6, %104 : vector<2x1x128xf32>
      %cst_41 = arith.constant dense<0xFF800000> : vector<2x1xf32>
      %106 = vector.multi_reduction <maximumf>, %105, %cst_41 [2] : vector<2x1x128xf32> to vector<2x1xf32>
      %107 = vector.shape_cast %106 : vector<2x1xf32> to vector<2x1x1xf32>
      %108 = vector.broadcast %107 : vector<2x1x1xf32> to vector<2x1x128xf32>
      %109 = arith.cmpf oeq, %105, %108 : vector<2x1x128xf32>
      %c128_i32 = arith.constant 128 : i32
      %110 = vector.broadcast %c128_i32 : i32 to vector<2x1x128xi32>
      %111 = arith.select %109, %1, %110 : vector<2x1x128xi1>, vector<2x1x128xi32>
      %cst_42 = arith.constant dense<2147483647> : vector<2x1xi32>
      %112 = vector.multi_reduction <minsi>, %111, %cst_42 [2] : vector<2x1x128xi32> to vector<2x1xi32>
      %113 = vector.shape_cast %112 : vector<2x1xi32> to vector<2x1x1xi32>
      scf.yield %105, %113, %99 : vector<2x1x128xf32>, vector<2x1x1xi32>, vector<2x3x16xf32>
    }
    %c16_i32_4 = arith.constant 16 : i32
    %c0_5 = arith.constant 0 : index
    %c0_6 = arith.constant 0 : index
    %c0_7 = arith.constant 0 : index
    %8 = vector.load %arg2[%c0_5, %c0_6, %c0_7] : memref<2x3x16xf32, #tpu.memory_space<vmem>>, vector<2x3x16xf32>
    tpu.vector_store %arg2[%c0_5, %c0_6, %c0_7], %7#2 {strides = array<i32>} : memref<2x3x16xf32, #tpu.memory_space<vmem>>, vector<2x3x16xf32>,
    %9 = arith.mulf %0, %0 : vector<2x3x128xf32>
    %cst_8 = arith.constant dense<0.000000e+00> : vector<2x128xf32>
    %10 = vector.multi_reduction <add>, %9, %cst_8 [1] : vector<2x3x128xf32> to vector<2x128xf32>
    %11 = vector.shape_cast %10 : vector<2x128xf32> to vector<2x1x128xf32>
    %12 = vector.extract_strided_slice %7#2 {offsets = [0, 0, 0], sizes = [1, 3, 16], strides = [1, 1, 1]} : vector<2x3x16xf32> to vector<1x3x16xf32>
    %13 = vector.shape_cast %12 : vector<1x3x16xf32> to vector<3x16xf32>
    %14 = vector.extract_strided_slice %0 {offsets = [0, 0, 0], sizes = [1, 3, 128], strides = [1, 1, 1]} : vector<2x3x128xf32> to vector<1x3x128xf32>
    %15 = vector.shape_cast %14 : vector<1x3x128xf32> to vector<3x128xf32>
    %cst_9 = arith.constant dense<0.000000e+00> : vector<16x128xf32>
    %16 = tpu.matmul %13, %15, %cst_9 {dimension_numbers = #tpu.dot_dimension_numbers<[0], [0], [1], [1], [0, 1, 1, 1], [], []>, precision = #tpu.contract_precision<fp32>} : vector<3x16xf32>, vector<3x128xf32>, vector<16x128xf32> -> vector<16x128xf32>
    %17 = vector.extract_strided_slice %11 {offsets = [0, 0, 0], sizes = [1, 1, 128], strides = [1, 1, 1]} : vector<2x1x128xf32> to vector<1x1x128xf32>
    %18 = vector.shape_cast %17 : vector<1x1x128xf32> to vector<1x128xf32>
    %cst_10 = arith.constant 2.000000e+00 : f32
    %19 = vector.broadcast %cst_10 : f32 to vector<16x128xf32>
    %20 = arith.mulf %19, %16 : vector<16x128xf32>
    %21 = vector.broadcast %18 : vector<1x128xf32> to vector<16x128xf32>
    %22 = arith.subf %21, %20 : vector<16x128xf32>
    %23 = vector.extract_strided_slice %7#2 {offsets = [1, 0, 0], sizes = [1, 3, 16], strides = [1, 1, 1]} : vector<2x3x16xf32> to vector<1x3x16xf32>
    %24 = vector.shape_cast %23 : vector<1x3x16xf32> to vector<3x16xf32>
    %25 = vector.extract_strided_slice %0 {offsets = [1, 0, 0], sizes = [1, 3, 128], strides = [1, 1, 1]} : vector<2x3x128xf32> to vector<1x3x128xf32>
    %26 = vector.shape_cast %25 : vector<1x3x128xf32> to vector<3x128xf32>
    %cst_11 = arith.constant dense<0.000000e+00> : vector<16x128xf32>
    %27 = tpu.matmul %24, %26, %cst_11 {dimension_numbers = #tpu.dot_dimension_numbers<[0], [0], [1], [1], [0, 1, 1, 1], [], []>, precision = #tpu.contract_precision<fp32>} : vector<3x16xf32>, vector<3x128xf32>, vector<16x128xf32> -> vector<16x128xf32>
    %28 = vector.extract_strided_slice %11 {offsets = [1, 0, 0], sizes = [1, 1, 128], strides = [1, 1, 1]} : vector<2x1x128xf32> to vector<1x1x128xf32>
    %29 = vector.shape_cast %28 : vector<1x1x128xf32> to vector<1x128xf32>
    %cst_12 = arith.constant 2.000000e+00 : f32
    %30 = vector.broadcast %cst_12 : f32 to vector<16x128xf32>
    %31 = arith.mulf %30, %27 : vector<16x128xf32>
    %32 = vector.broadcast %29 : vector<1x128xf32> to vector<16x128xf32>
    %33 = arith.subf %32, %31 : vector<16x128xf32>
    %34 = vector.shape_cast %22 : vector<16x128xf32> to vector<1x16x128xf32>
    %35 = vector.shape_cast %33 : vector<16x128xf32> to vector<1x16x128xf32>
    %36 = tpu.concatenate %34, %35 in 0 : vector<1x16x128xf32>, vector<1x16x128xf32> -> vector<2x16x128xf32>
    %37 = tpu.iota {dimensions = array<i32: 2>} : vector<2x16x128xi32>
    %c0_i32_13 = arith.constant 0 : i32
    %c8_i32 = arith.constant 8 : i32
    %38 = arith.addi %c0_i32_13, %c8_i32 : i32
    %c1_i32_14 = arith.constant 1 : i32
    %39 = scf.for %arg5 = %c0_i32_13 to %38 step %c1_i32_14 iter_args(%arg6 = %36) -> (vector<2x16x128xf32>)  : i32 {
      %cst_39 = arith.constant dense<0x7F800000> : vector<2x16xf32>
      %87 = vector.multi_reduction <minimumf>, %arg6, %cst_39 [2] : vector<2x16x128xf32> to vector<2x16xf32>
      %88 = vector.shape_cast %87 : vector<2x16xf32> to vector<2x16x1xf32>
      %89 = vector.broadcast %88 : vector<2x16x1xf32> to vector<2x16x128xf32>
      %90 = arith.cmpf oeq, %arg6, %89 : vector<2x16x128xf32>
      %c128_i32 = arith.constant 128 : i32
      %91 = vector.broadcast %c128_i32 : i32 to vector<2x16x128xi32>
      %92 = arith.select %90, %37, %91 : vector<2x16x128xi1>, vector<2x16x128xi32>
      %cst_40 = arith.constant dense<2147483647> : vector<2x16xi32>
      %93 = vector.multi_reduction <minsi>, %92, %cst_40 [2] : vector<2x16x128xi32> to vector<2x16xi32>
      %94 = vector.shape_cast %93 : vector<2x16xi32> to vector<2x16x1xi32>
      %95 = vector.broadcast %94 : vector<2x16x1xi32> to vector<2x16x128xi32>
      %96 = arith.cmpi eq, %37, %95 : vector<2x16x128xi32>
      %97 = arith.extui %96 : vector<2x16x128xi1> to vector<2x16x128xi32>
      %98 = arith.sitofp %97 : vector<2x16x128xi32> to vector<2x16x128xf32>
      %99 = arith.index_cast %arg5 : i32 to index
      %c0_41 = arith.constant 0 : index
      %c0_42 = arith.constant 0 : index
      %c0_43 = arith.constant 0 : index
      %100 = vector.load %arg4[%99, %c0_41, %c0_42, %c0_43] : memref<8x2x16x128xf32, #tpu.memory_space<vmem>>, vector<1x2x16x128xf32>
      %101 = vector.shape_cast %100 : vector<1x2x16x128xf32> to vector<2x16x128xf32>
      %102 = vector.shape_cast %98 : vector<2x16x128xf32> to vector<1x2x16x128xf32>
      tpu.vector_store %arg4[%99, %c0_41, %c0_42, %c0_43], %102 {strides = array<i32>} : memref<8x2x16x128xf32, #tpu.memory_space<vmem>>, vector<1x2x16x128xf32>,
      %cst_44 = arith.constant 0x7F800000 : f32
      %103 = vector.broadcast %cst_44 : f32 to vector<2x16x128xf32>
      %104 = arith.select %96, %103, %arg6 : vector<2x16x128xi1>, vector<2x16x128xf32>
      scf.yield %104 : vector<2x16x128xf32>
    }
    %c8_i32_15 = arith.constant 8 : i32
    %40 = tpu.iota {dimensions = array<i32: 0>} : vector<16x128xi32>
    %41 = tpu.iota {dimensions = array<i32: 1>} : vector<16x128xi32>
    %c16_i32_16 = arith.constant 16 : i32
    %c0_i32_17 = arith.constant 0 : i32
    %42 = arith.cmpi eq, %c16_i32_16, %c0_i32_17 : i32
    %c1_i32_18 = arith.constant 1 : i32
    %43 = arith.select %42, %c1_i32_18, %c16_i32_16 : i32
    %44 = vector.broadcast %43 : i32 to vector<16x128xi32>
    %45 = arith.remsi %41, %44 : vector<16x128xi32>
    %c0_i32_19 = arith.constant 0 : i32
    %46 = vector.broadcast %c0_i32_19 : i32 to vector<16x128xi32>
    %47 = arith.cmpi ne, %45, %46 : vector<16x128xi32>
    %c0_i32_20 = arith.constant 0 : i32
    %48 = vector.broadcast %c0_i32_20 : i32 to vector<16x128xi32>
    %49 = arith.cmpi slt, %45, %48 : vector<16x128xi32>
    %c0_i32_21 = arith.constant 0 : i32
    %50 = arith.cmpi slt, %43, %c0_i32_21 : i32
    %51 = vector.broadcast %50 : i1 to vector<16x128xi1>
    %52 = vector.broadcast %51 : vector<16x128xi1> to vector<16x128xi1>
    %53 = arith.xori %49, %52 : vector<16x128xi1>
    %54 = arith.andi %53, %47 : vector<16x128xi1>
    %55 = vector.broadcast %43 : i32 to vector<16x128xi32>
    %56 = arith.addi %45, %55 : vector<16x128xi32>
    %57 = arith.select %54, %56, %45 : vector<16x128xi1>, vector<16x128xi32>
    %58 = arith.cmpi eq, %40, %57 : vector<16x128xi32>
    %59 = arith.extui %58 : vector<16x128xi1> to vector<16x128xi32>
    %60 = arith.sitofp %59 : vector<16x128xi32> to vector<16x128xf32>
    %c0_22 = arith.constant 0 : index
    %c0_23 = arith.constant 0 : index
    %c0_24 = arith.constant 0 : index
    %c0_25 = arith.constant 0 : index
    %61 = vector.load %arg4[%c0_22, %c0_23, %c0_24, %c0_25] : memref<8x2x16x128xf32, #tpu.memory_space<vmem>>, vector<8x1x16x128xf32>
    %62 = vector.shape_cast %61 : vector<8x1x16x128xf32> to vector<8x16x128xf32>
    %63 = vector.shape_cast %62 : vector<8x16x128xf32> to vector<128x128xf32>
    %64 = vector.extract_strided_slice %0 {offsets = [0, 0, 0], sizes = [1, 3, 128], strides = [1, 1, 1]} : vector<2x3x128xf32> to vector<1x3x128xf32>
    %65 = vector.shape_cast %64 : vector<1x3x128xf32> to vector<3x128xf32>
    %cst_26 = arith.constant dense<0.000000e+00> : vector<3x128xf32>
    %66 = tpu.matmul %65, %63, %cst_26 {dimension_numbers = #tpu.dot_dimension_numbers<[1], [1], [0], [0], [0, 0, 1, 0], [], []>, precision = #tpu.contract_precision<fp32>} : vector<3x128xf32>, vector<128x128xf32>, vector<3x128xf32> -> vector<3x128xf32>
    %67 = vector.extract_strided_slice %7#2 {offsets = [0, 0, 0], sizes = [1, 3, 16], strides = [1, 1, 1]} : vector<2x3x16xf32> to vector<1x3x16xf32>
    %68 = vector.shape_cast %67 : vector<1x3x16xf32> to vector<3x16xf32>
    %cst_27 = arith.constant dense<0.000000e+00> : vector<3x128xf32>
    %69 = tpu.matmul %68, %60, %cst_27 {dimension_numbers = #tpu.dot_dimension_numbers<[1], [0], [0], [1], [0, 0, 1, 1], [], []>, precision = #tpu.contract_precision<fp32>} : vector<3x16xf32>, vector<16x128xf32>, vector<3x128xf32> -> vector<3x128xf32>
    %70 = arith.subf %66, %69 : vector<3x128xf32>
    %c0_28 = arith.constant 0 : index
    %c0_29 = arith.constant 0 : index
    %c0_30 = arith.constant 0 : index
    %71 = vector.load %arg3[%c0_28, %c0_29, %c0_30] : memref<2x3x128xf32, #tpu.memory_space<vmem>>, vector<1x3x128xf32>
    %72 = vector.shape_cast %71 : vector<1x3x128xf32> to vector<3x128xf32>
    %73 = vector.shape_cast %70 : vector<3x128xf32> to vector<1x3x128xf32>
    tpu.vector_store %arg3[%c0_28, %c0_29, %c0_30], %73 {strides = array<i32>} : memref<2x3x128xf32, #tpu.memory_space<vmem>>, vector<1x3x128xf32>,
    %c0_31 = arith.constant 0 : index
    %c1 = arith.constant 1 : index
    %c0_32 = arith.constant 0 : index
    %c0_33 = arith.constant 0 : index
    %74 = vector.load %arg4[%c0_31, %c1, %c0_32, %c0_33] : memref<8x2x16x128xf32, #tpu.memory_space<vmem>>, vector<8x1x16x128xf32>
    %75 = vector.shape_cast %74 : vector<8x1x16x128xf32> to vector<8x16x128xf32>
    %76 = vector.shape_cast %75 : vector<8x16x128xf32> to vector<128x128xf32>
    %77 = vector.extract_strided_slice %0 {offsets = [1, 0, 0], sizes = [1, 3, 128], strides = [1, 1, 1]} : vector<2x3x128xf32> to vector<1x3x128xf32>
    %78 = vector.shape_cast %77 : vector<1x3x128xf32> to vector<3x128xf32>
    %cst_34 = arith.constant dense<0.000000e+00> : vector<3x128xf32>
    %79 = tpu.matmul %78, %76, %cst_34 {dimension_numbers = #tpu.dot_dimension_numbers<[1], [1], [0], [0], [0, 0, 1, 0], [], []>, precision = #tpu.contract_precision<fp32>} : vector<3x128xf32>, vector<128x128xf32>, vector<3x128xf32> -> vector<3x128xf32>
    %80 = vector.extract_strided_slice %7#2 {offsets = [1, 0, 0], sizes = [1, 3, 16], strides = [1, 1, 1]} : vector<2x3x16xf32> to vector<1x3x16xf32>
    %81 = vector.shape_cast %80 : vector<1x3x16xf32> to vector<3x16xf32>
    %cst_35 = arith.constant dense<0.000000e+00> : vector<3x128xf32>
    %82 = tpu.matmul %81, %60, %cst_35 {dimension_numbers = #tpu.dot_dimension_numbers<[1], [0], [0], [1], [0, 0, 1, 1], [], []>, precision = #tpu.contract_precision<fp32>} : vector<3x16xf32>, vector<16x128xf32>, vector<3x128xf32> -> vector<3x128xf32>
    %83 = arith.subf %79, %82 : vector<3x128xf32>
    %c1_36 = arith.constant 1 : index
    %c0_37 = arith.constant 0 : index
    %c0_38 = arith.constant 0 : index
    %84 = vector.load %arg3[%c1_36, %c0_37, %c0_38] : memref<2x3x128xf32, #tpu.memory_space<vmem>>, vector<1x3x128xf32>
    %85 = vector.shape_cast %84 : vector<1x3x128xf32> to vector<3x128xf32>
    %86 = vector.shape_cast %83 : vector<3x128xf32> to vector<1x3x128xf32>
    tpu.vector_store %arg3[%c1_36, %c0_37, %c0_38], %86 {strides = array<i32>} : memref<2x3x128xf32, #tpu.memory_space<vmem>>, vector<1x3x128xf32>,
    return
  }
  func.func @transform_0(%arg0: i32) -> (i32, i32, i32) {
    %c0_i32 = arith.constant 0 : i32
    %c0_i32_0 = arith.constant 0 : i32
    %c0_i32_1 = arith.constant 0 : i32
    return %arg0, %c0_i32, %c0_i32_0 : i32, i32, i32
  }
  func.func @transform_1(%arg0: i32) -> (i32, i32, i32) {
    %c0_i32 = arith.constant 0 : i32
    %c0_i32_0 = arith.constant 0 : i32
    %c0_i32_1 = arith.constant 0 : i32
    return %arg0, %c0_i32, %c0_i32_0 : i32, i32, i32
  }
  func.func @transform_2(%arg0: i32) -> (i32, i32, i32) {
    %c0_i32 = arith.constant 0 : i32
    %c0_i32_0 = arith.constant 0 : i32
    %c0_i32_1 = arith.constant 0 : i32
    return %arg0, %c0_i32, %c0_i32_0 : i32, i32, i32
  }
}

</mosaic_0001>

<bundles_post_ra>
// kernel: tpu_custom_call.1
= control target key start
LH: loop header
LB: loop body
LE: loop exit
PB: predicated region body
PF: predicated region fallthrough
CT: control target
= control target key end

     0   :  { %v12_v0 = vlaneseq  ;;  %v4702_v4 = vmov 0.0   ;;  %v4704_v5 = vmov 0.0   ;;  %v4706_v6 = vmov 0   ;;  %s4714_s13 = smov 0   ;;  %s5763_s0 = inlined_call_operand.vmem [shape: f32[2,3,128], index: 0, kind: input, shape index: {}]   ;;  %s5764_s1 = inlined_call_operand.vmem [shape: f32[2,3,16], index: 1, kind: output, shape index: {0}]   ;;  %s5765_s2 = inlined_call_operand.vmem [shape: f32[2,3,128], index: 2, kind: output, shape index: {1}]  }
   0x1   :  { %v4692_v1 = vld [vmem:[%s5763_s0] sm:$0x7]  ;;  %v4697_v2 = vld [vmem:[%s5763_s0 + $0x4] sm:$0x7]  ;;  %v4708_v7 = vmov 0  }
   0x2   :  { %v4700_v3 = vand.u32 127, %v12_v0  ;;  %v4710_v8 = vmov 1e+10   ;;  %v4712_v9 = vmov 1e+10  }
   0x3 LB: > { %v4669_v10 = vmov 0.0   ;;  %vm34_vm2 = vcmask 1042432   ;;  %v41_v17 = vstv %s4647_s13  ;;  %s19_s13 = sadd.s32 1, %s4647_s13   ;;  %s4647_s13 = sphi %s4714_s13, %s19_s13   ;;  %v4643_v9 = vphi %v4712_v9, %v63_v9   ;;  %v4639_v8 = vphi %v4710_v8, %v64_v8   ;;  %v4635_v7 = vphi %v4708_v7, %v86_v7   ;;  %v4631_v6 = vphi %v4706_v6, %v100_v6   ;;  %v4627_v5 = vphi %v4704_v5, %v5778_v5   ;;  %v4623_v4 = vphi %v4702_v4, %v5777_v4  }
   0x4   : > { %vm26_vm0 = vcmp.eq.s32.totalorder %v4700_v3, %v4635_v7  ;;  %vm27_vm1 = vcmp.eq.s32.totalorder %v4700_v3, %v4631_v6  ;;  %vm42_vm3 = vcmp.eq.s32.totalorder %v4700_v3, %v41_v17  ;;  %p16_p0 = scmp.ge.s32.totalorder %s19_s13, 16  }
   0x5   : > { %v3610_v11 = vsel %vm26_vm0, 1.0, %v4669_v10  ;;  %v3611_v12 = vsel %vm27_vm1, 1.0, %v4669_v10  ;;  %v161_v10 = vsel (%p16_p0), %vm34_vm2, %v4692_v1, 0  ;;  %vm101_vm8 = vcmask (%p16_p0), 124928  }
   0x6   : > { %v32_v13 = vmul.f32 %v3610_v11, %v4692_v1  ;;  %v33_v14 = vmul.f32 %v3611_v12, %v4697_v2  ;;  %v194_v11 = vand.u32 (%p16_p0), 4294901760, %v161_v10  ;;  %vm153_vm9 = vcmask (%p16_p0), 23552  }
   0x8   : > { %v35_v15 = vsel %vm34_vm2, %v32_v13, 0.0  ;;  %v38_v16 = vsel %vm34_vm2, %v33_v14, 0.0  ;;  %v281_v12 = vsub.f32 (%p16_p0), %v161_v10, %v194_v11  ;;  %3908 = vmatprep.subr.mxu0 (%p16_p0), %v194_v11 }
   0x9   : > { %36 = vadd.xlane.f32.xlu0 %v35_v15  ;;  %3909 = vmatpush3.msra.mxu0 (%p16_p0), %v194_v11 }
   0xa   :  { %v282_v13 = vand.u32 (%p16_p0), 4294901760, %v281_v12  ;;  %3918 = vmatprep.subr.mxu0 (%p16_p0), %v281_v12 }
   0xc   :  { %v283_v14 = vsub.f32 (%p16_p0), %v281_v12, %v282_v13 }
   0xd   : > { %39 = vadd.xlane.f32.xlu0 %v38_v16 }
   0xe   :  { %v284_v15 = vand.u32 (%p16_p0), 4294901760, %v283_v14 }
  0x10   :  { %3913 = vmatprep.subr.mxu1 (%p16_p0), %v284_v15 }
  0x11   :  { %3914 = vmatpush3.msra.mxu1 (%p16_p0), %v284_v15 }
  0x12   :  { %3923 = vmatprep.subr.mxu1 (%p16_p0), %v194_v11 }
  0x92   : > { %v37_v18 = vpop.xlane.xlu0 %36 }
  0x93   : > { %v4733_v5 = vsel %vm42_vm3, %v37_v18, %v4627_v5   ;;  %v45_v20 = vsub.f32 %v4692_v1, %v37_v18 }
  0x94   : > { %v5775_v19 = vmov %v4733_v5 }
  0x95   : > { %v47_v21 = vmul.f32 %v45_v20, %v45_v20  ;;  %v5778_v5 = vmov %v5775_v19  ;;  %102 = vst.msk [vmem:[%s5764_s1] sm:$0x7] (%p16_p0), %vm101_vm8, %v5775_v19 }
  0x96   : > { %v40_v22 = vpop.xlane.xlu0 %39 }
  0x97   : > { %v49_v23 = vsel %vm34_vm2, %v47_v21, 0.0  ;;  %v4737_v4 = vsel %vm42_vm3, %v40_v22, %v4623_v4   ;;  %v46_v25 = vsub.f32 %v4697_v2, %v40_v22 }
  0x98   : > { %v5776_v24 = vmov %v4737_v4  ;;  %v50_v26 = vrot.slane %v49_v23, 4 }
  0x99   : > { %v48_v27 = vmul.f32 %v46_v25, %v46_v25  ;;  %v5777_v4 = vmov %v5776_v24  ;;  %103 = vst.msk [vmem:[%s5764_s1 + $0x4] sm:$0x7] (%p16_p0), %vm101_vm8, %v5776_v24  ;;  %s4812_s1 = smov (%p16_p0), 0  }
  0x9a   : > { %v51_v28 = vadd.f32 %v50_v26, %v49_v23  ;;  %v695_v4 = vsel (%p16_p0), %vm34_vm2, %v4697_v2, 0 }
  0x9b   : > { %v56_v29 = vsel %vm34_vm2, %v48_v27, 0.0  ;;  %v4774_v5 = vand.u32 (%p16_p0), 4294901760, %v695_v4 }
  0x9c   : > { %v52_v30 = vrot.slane %v51_v28, 2  ;;  %v57_v31 = vrot.slane %v56_v29, 4 }
  0x9e   : > { %v58_v32 = vadd.f32 %v57_v31, %v56_v29  ;;  %v53_v33 = vadd.f32 %v52_v30, %v51_v28 }
  0xa0   : > { %v59_v34 = vrot.slane %v58_v32, 2  ;;  %v54_v35 = vrot.slane %v53_v33, 1 }
  0xa2   : > { %v55_v36 = vadd.f32 %v54_v35, %v53_v33  ;;  %v60_v37 = vadd.f32 %v59_v34, %v58_v32 }
  0xa4   : > { %v63_v9 = vmin.f32 %v4643_v9, %v55_v36   ;;  %v61_v38 = vrot.slane %v60_v37, 1 }
  0xa6   : > { %65 = vmax.xlane.f32.xlu1 %v63_v9  ;;  %v62_v39 = vadd.f32 %v61_v38, %v60_v37 }
  0xa8   : > { %v64_v8 = vmin.f32 %v4639_v8, %v62_v39  }
  0xaa   : > { %67 = vmax.xlane.f32.xlu1 %v64_v8 }
 0x12f   : > { %v66_v40 = vpop.xlane.xlu1 %65 }
 0x130   : > { %vm69_vm4 = vcmp.eq.f32.partialorder %v63_v9, %v66_v40 }
 0x131   : > { %v71_v41 = vsel %vm69_vm4, %v4700_v3, 128 }
 0x132   : > { %v74_v42 = vshra.s32 %v71_v41, 16  ;;  %v73_v48 = vand.u32 65535, %v71_v41 }
 0x133   : > { %v68_v43 = vpop.xlane.xlu1 %67 }
 0x134   : > { %vm70_vm5 = vcmp.eq.f32.partialorder %v64_v8, %v68_v43  ;;  %v76_v44 = vcvt.s32.f32 %v74_v42  ;;  %v75_v49 = vcvt.s32.f32 %v73_v48 }
 0x135   : > { %v72_v45 = vsel %vm70_vm5, %v4700_v3, 128 }
 0x136   : > { %v88_v46 = vshra.s32 %v72_v45, 16  ;;  %77 = vmin.xlane.f32.xlu0 %v76_v44  ;;  %v87_v50 = vand.u32 65535, %v72_v45 }
 0x138   : > { %v90_v47 = vcvt.s32.f32 %v88_v46  ;;  %v89_v53 = vcvt.s32.f32 %v87_v50  ;;  %v104_v46 = vmul.f32 (%p16_p0), %v4692_v1, %v4692_v1 }
 0x13a   : > { %91 = vmin.xlane.f32.xlu1 %v90_v47 }
 0x1bf   : > { %v78_v51 = vpop.xlane.xlu0 %77 }
 0x1c0   : > { %vm79_vm6 = vcmp.eq.f32.partialorder %v76_v44, %v78_v51  ;;  %v84_v56 = vcvt.f32.s32 %v78_v51 }
 0x1c1   : > { %v80_v52 = vsel %vm79_vm6, %v75_v49, inf }
 0x1c2   : > { %81 = vmin.xlane.f32.xlu0 %v80_v52  ;;  %v85_v58 = vshll.u32 %v84_v56, 16 }
 0x1c3   : > { %v92_v54 = vpop.xlane.xlu1 %91 }
 0x1c4   : > { %vm93_vm7 = vcmp.eq.f32.partialorder %v90_v47, %v92_v54  ;;  %v98_v59 = vcvt.f32.s32 %v92_v54  ;;  %v107_v47 = vsel (%p16_p0), %vm34_vm2, %v104_v46, 0.0 }
 0x1c5   : > { %v94_v55 = vsel %vm93_vm7, %v89_v53, inf  ;;  %v108_v48 = vrot.slane (%p16_p0), %v107_v47, 4  ;;  %v105_v53 = vmul.f32 (%p16_p0), %v4697_v2, %v4697_v2 }
 0x1c6   : > { %95 = vmin.xlane.f32.xlu1 %v94_v55  ;;  %v99_v62 = vshll.u32 %v98_v59, 16 }
 0x1c7   :  { %v109_v51 = vadd.f32 (%p16_p0), %v108_v48, %v107_v47 }
 0x1c9   :  { %v110_v55 = vrot.slane (%p16_p0), %v109_v51, 2 }
 0x1ef   :  { %121 = vxpose.xlu0.b32.start.end [1/1] (short) (narrow) (%p16_p0), %v5775_v19, 16 }
 0x1f4   :  { %656 = vxpose.xlu0.b32.start.end [1/1] (short) (narrow) (%p16_p0), %v5776_v24, 16 }
 0x24b   : > { %v82_v57 = vpop.xlane.xlu0 %81 }
 0x24c   : > { %v83_v60 = vcvt.f32.s32 %v82_v57 }
 0x24e   : > { %v86_v7 = vadd.s32 %v85_v58, %v83_v60   ;;  %18 = sbr.rel (!%p16_p0) target bundleno = 3 (0x3), region = 49  ;;  %v114_v58 = vsel (%p16_p0), %vm34_vm2, %v105_v53, 0.0 }
 0x24f   : > { %v96_v61 = vpop.xlane.xlu1 %95 }
 0x250   : > { %v97_v63 = vcvt.f32.s32 %v96_v61 }
 0x252   : > { %v100_v6 = vadd.s32 %v99_v62, %v97_v63   ;;  %v111_v62 = vadd.f32 (%p16_p0), %v110_v55, %v109_v51  ;;  %v115_v63 = vrot.slane (%p16_p0), %v114_v58, 4 }
 0x253   :  { %v4777_v6 = vsub.f32 %v695_v4, %v4774_v5 }
 0x254   :  { %v112_v4 = vrot.slane %v111_v62, 1 }
 0x255   :  { %v4781_v16 = vand.u32 4294901760, %v4777_v6 }
 0x257   :  { %v817_v23 = vsub.f32 %v4777_v6, %v4781_v16 }
 0x259   :  { %v818_v32 = vand.u32 4294901760, %v817_v23 }
 0x26b   :  { %v137_v7 = vpop.trf.xlu0 }
 0x26c   :  { %v155_v8 = vsel %vm153_vm9, %v137_v7, 0 }
 0x26d   :  { %v229_v9 = vand.u32 4294901760, %v155_v8 }
 0x26f   :  { %v230_v17 = vsub.f32 %v155_v8, %v229_v9  ;;  %v138_v18 = vpop.trf.xlu0  ;;  %3915 = vmatprep.mubr.f32.mxu1 %v229_v9 }
 0x270   :  { %v158_v20 = vsel %vm153_vm9, %v138_v18, 0  ;;  %v113_v18 = vadd.f32 %v112_v4, %v111_v62 }
 0x271   :  { %v239_v21 = vand.u32 4294901760, %v158_v20  ;;  %v231_v22 = vand.u32 4294901760, %v230_v17 }
 0x273   :  { %v240_v25 = vsub.f32 %v158_v20, %v239_v21  ;;  %v672_v26 = vpop.trf.xlu0  ;;  %3916 = vmatmul.mubr.f32.vlgmr.msra.gmra.mxu1 %v239_v21  ;;  %v232_v27 = vsub.f32 %v230_v17, %v231_v22 }
 0x274   :  { %v689_v28 = vsel %vm153_vm9, %v672_v26, 0  ;;  %3925 = vmatprep.mubr.f32.mxu1 %v231_v22  ;;  %3924 = vmatpush3.msra.mxu1 %v194_v11 }
 0x275   :  { %v241_v29 = vand.u32 4294901760, %v240_v25  ;;  %v763_v30 = vand.u32 4294901760, %v689_v28  ;;  %v233_v31 = vand.u32 4294901760, %v232_v27  ;;  %3933 = vmatprep.subr.mxu1 %v194_v11 }
 0x277   :  { %v764_v33 = vsub.f32 %v689_v28, %v763_v30  ;;  %v673_v34 = vpop.trf.xlu0  ;;  %3910 = vmatprep.mubr.f32.mxu0 %v233_v31  ;;  %3926 = vmatmul.mubr.f32.vlgmr.msra.gmra.mxu1 %v241_v29  ;;  %v242_v35 = vsub.f32 %v240_v25, %v241_v29 }
 0x278   :  { %v692_v36 = vsel %vm153_vm9, %v673_v34, 0  ;;  %3935 = vmatprep.mubr.f32.mxu1 %v229_v9  ;;  %3934 = vmatpush3.msra.mxu1 %v194_v11 }
 0x279   :  { %v773_v37 = vand.u32 4294901760, %v692_v36  ;;  %v243_v38 = vand.u32 4294901760, %v242_v35  ;;  %3943 = vmatprep.subr.mxu1 %v818_v32  ;;  %v765_v39 = vand.u32 4294901760, %v764_v33 }
 0x27b   :  { %v774_v40 = vsub.f32 %v692_v36, %v773_v37  ;;  %3911 = vmatmul.mubr.f32.vlgmr.msra.gmra.mxu0 %v243_v38  ;;  %3936 = vmatmul.mubr.f32.vlgmr.msra.gmra.mxu1 %v239_v21  ;;  %v766_v42 = vsub.f32 %v764_v33, %v765_v39 }
 0x27c   :  { %3919 = vmatpush3.msra.mxu0 %v281_v12  ;;  %3920 = vmatprep.mubr.f32.mxu0 %v230_v17 }
 0x27d   :  { %v775_v41 = vand.u32 4294901760, %v774_v40  ;;  %3945 = vmatprep.mubr.f32.mxu1 %v763_v30  ;;  %3928 = vmatprep.subr.mxu0 %v282_v13  ;;  %v767_v44 = vand.u32 4294901760, %v766_v42 }
 0x27e   :  { %3944 = vmatpush3.msra.mxu1 %v818_v32 }
 0x27f   :  { %3921 = vmatmul.mubr.f32.vlgmr.msra.gmra.mxu0 %v240_v25  ;;  %3946 = vmatmul.mubr.f32.vlgmr.msra.gmra.mxu1 %v773_v37  ;;  %v776_v43 = vsub.f32 %v774_v40, %v775_v41 }
 0x280   :  { %3929 = vmatpush3.msra.mxu0 %v282_v13  ;;  %3930 = vmatprep.mubr.f32.mxu0 %v229_v9 }
 0x281   :  { %3955 = vmatprep.mubr.f32.mxu1 %v765_v39  ;;  %3953 = vmatprep.subr.mxu1 %v4774_v5  ;;  %v777_v45 = vand.u32 4294901760, %v776_v43 }
 0x282   :  { %3938 = vmatprep.subr.mxu0 %v4774_v5  ;;  %3954 = vmatpush3.msra.mxu1 %v4774_v5 }
 0x283   :  { %3931 = vmatmul.mubr.f32.vlgmr.msra.gmra.mxu0 %v239_v21  ;;  %3956 = vmatmul.mubr.f32.vlgmr.msra.gmra.mxu1 %v775_v41 }
 0x284   :  { %3939 = vmatpush3.msra.mxu0 %v4774_v5  ;;  %3940 = vmatprep.mubr.f32.mxu0 %v767_v44 }
 0x285   :  { %3965 = vmatprep.mubr.f32.mxu1 %v763_v30  ;;  %3963 = vmatprep.subr.mxu1 %v4774_v5 }
 0x286   :  { %3948 = vmatprep.subr.mxu0 %v4777_v6  ;;  %3964 = vmatpush3.msra.mxu1 %v4774_v5 }
 0x287   :  { %3941 = vmatmul.mubr.f32.vlgmr.msra.gmra.mxu0 %v777_v45  ;;  %3966 = vmatmul.mubr.f32.vlgmr.msra.gmra.mxu1 %v773_v37 }
 0x288   :  { %3949 = vmatpush3.msra.mxu0 %v4777_v6  ;;  %3950 = vmatprep.mubr.f32.mxu0 %v764_v33  ;;  %v116_v6 = vadd.f32 %v115_v63, %v114_v58 }
 0x289   :  { %3958 = vmatprep.subr.mxu0 %v4781_v16 }
 0x28a   :  { %v117_v22 = vrot.slane %v116_v6, 2 }
 0x28b   :  { %3951 = vmatmul.mubr.f32.vlgmr.msra.gmra.mxu0 %v774_v40 }
 0x28c   :  { %3959 = vmatpush3.msra.mxu0 %v4781_v16  ;;  %3960 = vmatprep.mubr.f32.mxu0 %v763_v30  ;;  %v118_v32 = vadd.f32 %v117_v22, %v116_v6 }
 0x28e   :  { %v119_v40 = vrot.slane %v118_v32, 1 }
 0x28f   :  { %3961 = vmatmul.mubr.f32.vlgmr.msra.gmra.mxu0 %v773_v37 }
 0x290   :  { %v120_v47 = vadd.f32 %v119_v40, %v118_v32 }
 0x333   :  { %v3917_v49 = vpop.f32.mrf.mxu1 }
 0x335   :  { %v321_v50 = vpop.f32.mrf.mxu1 }
 0x337   :  { %v3927_v52 = vpop.f32.mrf.mxu1 }
 0x339   :  { %v482_v54 = vpop.f32.mrf.mxu1 }
 0x33b   :  { %v3912_v56 = vpop.f32.mrf.mxu0  ;;  %v3937_v57 = vpop.f32.mrf.mxu1 }
 0x33c   :  { %v328_v61 = vadd.f32 %v3917_v49, %v3912_v56 }
 0x33d   :  { %v235_v59 = vpop.f32.mrf.mxu0  ;;  %v642_v60 = vpop.f32.mrf.mxu1 }
 0x33e   :  { %v322_v12 = vadd.f32 %v321_v50, %v235_v59 }
 0x33f   :  { %v3922_v10 = vpop.f32.mrf.mxu0  ;;  %v3947_v11 = vpop.f32.mrf.mxu1 }
 0x340   :  { %v409_v13 = vadd.f32 %v3922_v10, %v328_v61 }
 0x341   :  { %v401_v14 = vpop.f32.mrf.mxu0  ;;  %v855_v7 = vpop.f32.mrf.mxu1 }
 0x342   :  { %v402_v15 = vadd.f32 %v401_v14, %v322_v12  ;;  %v491_v5 = vadd.f32 %v3927_v52, %v409_v13 }
 0x343   :  { %v3932_v8 = vpop.f32.mrf.mxu0  ;;  %v3957_v23 = vpop.f32.mrf.mxu1 }
 0x344   :  { %v571_v9 = vadd.f32 %v3932_v8, %v491_v5  ;;  %v483_v16 = vadd.f32 %v482_v54, %v402_v15 }
 0x345   :  { %v564_v17 = vpop.f32.mrf.mxu0  ;;  %v1016_v33 = vpop.f32.mrf.mxu1 }
 0x346   :  { %v649_v20 = vadd.f32 %v3937_v57, %v571_v9  ;;  %v565_v21 = vadd.f32 %v564_v17, %v483_v16 }
 0x347   :  { %v3942_v25 = vpop.f32.mrf.mxu0  ;;  %v3967_v42 = vpop.f32.mrf.mxu1 }
 0x348   :  { %v653_v26 = vmul.f32 2.0, %v649_v20  ;;  %v643_v27 = vadd.f32 %v642_v60, %v565_v21  ;;  %v862_v31 = vadd.f32 %v3947_v11, %v3942_v25 }
 0x349   :  { %v769_v28 = vpop.f32.mrf.mxu0  ;;  %v1176_v50 = vpop.f32.mrf.mxu1 }
 0x34a   :  { %v655_v29 = vsub.f32 %v113_v18, %v653_v26   ;;  %v652_v30 = vmul.f32 2.0, %v643_v27  ;;  %v856_v36 = vadd.f32 %v855_v7, %v769_v28 }
 0x34b   :  { %v3952_v34 = vpop.f32.mrf.mxu0 }
 0x34c   :  { %v654_v35 = vsub.f32 %v113_v18, %v652_v30   ;;  %v943_v37 = vadd.f32 %v3952_v34, %v862_v31 }
 0x34d   :  { %v935_v38 = vpop.f32.mrf.mxu0 }
 0x34e   :  { %v936_v39 = vadd.f32 %v935_v38, %v856_v36  ;;  %v1025_v41 = vadd.f32 %v3957_v23, %v943_v37 }
 0x34f   :  { %v3962_v43 = vpop.f32.mrf.mxu0 }
 0x350   :  { %v1105_v44 = vadd.f32 %v3962_v43, %v1025_v41  ;;  %v1017_v45 = vadd.f32 %v1016_v33, %v936_v39 }
 0x351   :  { %v1098_v46 = vpop.f32.mrf.mxu0 }
 0x352   :  { %v1183_v48 = vadd.f32 %v3967_v42, %v1105_v44  ;;  %v1099_v49 = vadd.f32 %v1098_v46, %v1017_v45 }
 0x354   :  { %v1187_v51 = vmul.f32 2.0, %v1183_v48  ;;  %v1177_v52 = vadd.f32 %v1176_v50, %v1099_v49 }
 0x356   :  { %v1189_v53 = vsub.f32 %v120_v47, %v1187_v51   ;;  %v1186_v54 = vmul.f32 2.0, %v1177_v52 }
 0x358   :  { %v1188_v55 = vsub.f32 %v120_v47, %v1186_v54  }
 0x359 LB: > { %1200 = vmin.xlane.f32.xlu0 %v4663_v35  ;;  %1204 = vmin.xlane.f32.xlu1 %v4655_v55  ;;  %s3616_s17 = sshll.u32 %s4667_s1, 5  ;;  %v4670_v46 = vmov 0.0   ;;  %s1195_s1 = sadd.s32 1, %s4667_s1   ;;  %s4667_s1 = sphi %s4812_s1, %s1195_s1   ;;  %v4663_v35 = vphi %v654_v35, %v1290_v35   ;;  %v4659_v29 = vphi %v655_v29, %v1291_v29   ;;  %v4655_v55 = vphi %v1188_v55, %v1292_v55   ;;  %v4651_v53 = vphi %v1189_v53, %v1293_v53  }
 0x35a   : > { %s1285_s18 = scalar_lea.vmem [#allocation2], %s3616_s17  ;;  %p1192_p1 = scmp.ge.s32.totalorder %s1195_s1, 8  }
 0x35b   :  { %vm4672_vm6 = vmmov (%p1192_p1), 0   ;;  %vm1972_vm7 = vcmask (%p1192_p1), 130048  }
 0x35d   : > { %1202 = vmin.xlane.f32.xlu0 %v4659_v29  ;;  %1206 = vmin.xlane.f32.xlu1 %v4651_v53 }
 0x3e2   : > { %v1201_v56 = vpop.xlane.xlu0 %1200  ;;  %v1205_v57 = vpop.xlane.xlu1 %1204 }
 0x3e3   : > { %vm1208_vm10 = vcmp.eq.f32.partialorder %v4663_v35, %v1201_v56  ;;  %vm1210_vm11 = vcmp.eq.f32.partialorder %v4655_v55, %v1205_v57 }
 0x3e4   : > { %v1212_v58 = vsel %vm1208_vm10, %v4700_v3, 128  ;;  %v1214_v59 = vsel %vm1210_vm11, %v4700_v3, 128 }
 0x3e5   : > { %v1217_v60 = vshra.s32 %v1212_v58, 16  ;;  %v1245_v61 = vshra.s32 %v1214_v59, 16  ;;  %v1216_v6 = vand.u32 65535, %v1212_v58  ;;  %v1244_v9 = vand.u32 65535, %v1214_v59 }
 0x3e6   : > { %v1203_v62 = vpop.xlane.xlu0 %1202  ;;  %v1207_v63 = vpop.xlane.xlu1 %1206  ;;  %v4671_v59 = vmov (%p1192_p1), 0.0  }
 0x3e7   : > { %vm1209_vm12 = vcmp.eq.f32.partialorder %v4659_v29, %v1203_v62  ;;  %v1219_v10 = vcvt.s32.f32 %v1217_v60  ;;  %vm1211_vm13 = vcmp.eq.f32.partialorder %v4651_v53, %v1207_v63  ;;  %v1247_v14 = vcvt.s32.f32 %v1245_v61  ;;  %3968 = vmatprep.subr.mxu0 (%p1192_p1), %v4671_v59  ;;  %4003 = vmatprep.subr.mxu1 (%p1192_p1), %v4671_v59 }
 0x3e8   : > { %v1213_v11 = vsel %vm1209_vm12, %v4700_v3, 128  ;;  %v1215_v13 = vsel %vm1211_vm13, %v4700_v3, 128  ;;  %v1218_v7 = vcvt.s32.f32 %v1216_v6  ;;  %v1246_v20 = vcvt.s32.f32 %v1244_v9  ;;  %4000 = vmatprep.mubr.msk.f32.mxu0 (%p1192_p1), %vm4672_vm6, %v4671_v59  ;;  %4035 = vmatprep.mubr.msk.f32.mxu1 (%p1192_p1), %vm4672_vm6, %v4671_v59 }
 0x3e9   : > { %v1231_v12 = vshra.s32 %v1213_v11, 16  ;;  %1220 = vmin.xlane.f32.xlu0 %v1219_v10  ;;  %v1259_v15 = vshra.s32 %v1215_v13, 16  ;;  %v1230_v8 = vand.u32 65535, %v1213_v11  ;;  %v1258_v21 = vand.u32 65535, %v1215_v13 }
 0x3eb   : > { %v1233_v4 = vcvt.s32.f32 %v1231_v12  ;;  %v1261_v5 = vcvt.s32.f32 %v1259_v15  ;;  %v1232_v18 = vcvt.s32.f32 %v1230_v8  ;;  %v1260_v27 = vcvt.s32.f32 %v1258_v21 }
 0x3ed   : > { %1248 = vmin.xlane.f32.xlu0 %v1247_v14  ;;  %1234 = vmin.xlane.f32.xlu1 %v1233_v4 }
 0x3f1   : > { %1262 = vmin.xlane.f32.xlu1 %v1261_v5 }
 0x472   : > { %v1221_v16 = vpop.xlane.xlu0 %1220 }
 0x473   : > { %vm1222_vm14 = vcmp.eq.f32.partialorder %v1219_v10, %v1221_v16  ;;  %v1227_v31 = vcvt.f32.s32 %v1221_v16 }
 0x474   : > { %v1223_v17 = vsel %vm1222_vm14, %v1218_v7, inf }
 0x475   : > { %1224 = vmin.xlane.f32.xlu0 %v1223_v17  ;;  %v1228_v36 = vshll.u32 %v1227_v31, 16 }
 0x476   : > { %v1249_v22 = vpop.xlane.xlu0 %1248  ;;  %v1235_v23 = vpop.xlane.xlu1 %1234 }
 0x477   : > { %vm1250_vm15 = vcmp.eq.f32.partialorder %v1247_v14, %v1249_v22  ;;  %vm1236_vm0 = vcmp.eq.f32.partialorder %v1233_v4, %v1235_v23  ;;  %v1255_v32 = vcvt.f32.s32 %v1249_v22  ;;  %v1241_v33 = vcvt.f32.s32 %v1235_v23 }
 0x478   : > { %v1251_v25 = vsel %vm1250_vm15, %v1246_v20, inf  ;;  %v1237_v26 = vsel %vm1236_vm0, %v1232_v18, inf }
 0x479   : > { %1252 = vmin.xlane.f32.xlu0 %v1251_v25  ;;  %1238 = vmin.xlane.f32.xlu1 %v1237_v26  ;;  %v1256_v39 = vshll.u32 %v1255_v32, 16  ;;  %v1242_v40 = vshll.u32 %v1241_v33, 16 }
 0x47a   : > { %v1263_v28 = vpop.xlane.xlu1 %1262 }
 0x47b   : > { %vm1264_vm1 = vcmp.eq.f32.partialorder %v1261_v5, %v1263_v28  ;;  %v1269_v43 = vcvt.f32.s32 %v1263_v28 }
 0x47c   : > { %v1265_v30 = vsel %vm1264_vm1, %v1260_v27, inf }
 0x47d   : > { %1266 = vmin.xlane.f32.xlu1 %v1265_v30  ;;  %v1270_v51 = vshll.u32 %v1269_v43, 16 }
 0x4fe   : > { %v1225_v34 = vpop.xlane.xlu0 %1224 }
 0x4ff   : > { %v1226_v37 = vcvt.f32.s32 %v1225_v34 }
 0x501   : > { %v1229_v38 = vadd.s32 %v1228_v36, %v1226_v37 }
 0x502   : > { %v1253_v41 = vpop.xlane.xlu0 %1252  ;;  %v1239_v42 = vpop.xlane.xlu1 %1238 }
 0x503   : > { %vm1272_vm2 = vcmp.eq.s32.totalorder %v4700_v3, %v1229_v38  ;;  %v1254_v44 = vcvt.f32.s32 %v1253_v41  ;;  %v1240_v45 = vcvt.f32.s32 %v1239_v42 }
 0x504   : > { %v3612_v47 = vsel %vm1272_vm2, 1.0, %v4670_v46  ;;  %v1290_v35 = vsel %vm1272_vm2, inf, %v4663_v35  }
 0x505   : > { %1286 = vst [vmem:[%s1285_s18] sm:$0xff] %v3612_v47  ;;  %v1257_v48 = vadd.s32 %v1256_v39, %v1254_v44  ;;  %v1243_v49 = vadd.s32 %v1242_v40, %v1240_v45 }
 0x506   : > { %v1267_v50 = vpop.xlane.xlu1 %1266 }
 0x507   : > { %vm1274_vm3 = vcmp.eq.s32.totalorder %v4700_v3, %v1257_v48  ;;  %vm1273_vm4 = vcmp.eq.s32.totalorder %v4700_v3, %v1243_v49  ;;  %v1268_v52 = vcvt.f32.s32 %v1267_v50 }
 0x508   : > { %v3614_v54 = vsel %vm1274_vm3, 1.0, %v4670_v46  ;;  %v1292_v55 = vsel %vm1274_vm3, inf, %v4655_v55   ;;  %v3613_v56 = vsel %vm1273_vm4, 1.0, %v4670_v46  ;;  %v1291_v29 = vsel %vm1273_vm4, inf, %v4659_v29  }
 0x509   : > { %1288 = vst [vmem:[%s1285_s18 + $0x10] sm:$0xff] %v3614_v54  ;;  %1287 = vst [vmem:[%s1285_s18 + $0x8] sm:$0xff] %v3613_v56  ;;  %v1271_v57 = vadd.s32 %v1270_v51, %v1268_v52  ;;  %1194 = sbr.rel (!%p1192_p1) target bundleno = 857 (0x359), region = 60 }
 0x50b   : > { %vm1275_vm5 = vcmp.eq.s32.totalorder %v4700_v3, %v1271_v57 }
 0x50c   : > { %v3615_v58 = vsel %vm1275_vm5, 1.0, %v4670_v46  ;;  %v1293_v53 = vsel %vm1275_vm5, inf, %v4651_v53  }
 0x50d   : > { %1289 = vst [vmem:[%s1285_s18 + $0x18] sm:$0xff] %v3615_v58 }
 0x514   :  { %v1330_v60 = vld [vmem:[#allocation2 + $0xe8] sm:$0xff]  ;;  %v1329_v61 = vld [vmem:[#allocation2 + $0xe0] sm:$0xff] }
 0x515   :  { %v1328_v62 = vld [vmem:[#allocation2 + $0xc8] sm:$0xff]  ;;  %v4863_v63 = vand.u32 4294901760, %v1330_v60  ;;  %v4865_v10 = vand.u32 4294901760, %v1329_v61  ;;  %v1327_v12 = vld [vmem:[#allocation2 + $0xc0] sm:$0xff] }
 0x516   :  { %v4867_v11 = vand.u32 4294901760, %v1328_v62  ;;  %v4877_v35 = vand.u32 4294901760, %v1327_v12  ;;  %v1326_v55 = vld [vmem:[#allocation2 + $0xa8] sm:$0xff]  ;;  %v1325_v8 = vld [vmem:[#allocation2 + $0xa0] sm:$0xff] }
 0x517   :  { %3969 = vmatpush3.xpose.msra.mxu0 %v4863_v63  ;;  %v4875_v29 = vsub.f32 %v1330_v60, %v4863_v63  ;;  %v4880_v53 = vsub.f32 %v1329_v61, %v4865_v10  ;;  %v4888_v4 = vand.u32 4294901760, %v1326_v55  ;;  %v4902_v17 = vand.u32 4294901760, %v1325_v8  ;;  %v1324_v22 = vld [vmem:[#allocation2 + $0x88] sm:$0xff]  ;;  %v1323_v30 = vld [vmem:[#allocation2 + $0x80] sm:$0xff] }
 0x518   :  { %v4883_v13 = vsub.f32 %v1328_v62, %v4867_v11  ;;  %3970 = vmatprep.subr.mxu0 %v4671_v59  ;;  %v4899_v9 = vsub.f32 %v1327_v12, %v4877_v35  ;;  %v4914_v25 = vand.u32 4294901760, %v1324_v22  ;;  %v4926_v32 = vand.u32 4294901760, %v1323_v30  ;;  %v1322_v37 = vld [vmem:[#allocation2 + $0x68] sm:$0xff]  ;;  %v1321_v43 = vld [vmem:[#allocation2 + $0x60] sm:$0xff] }
 0x519   :  { %v1425_v14 = vand.u32 4294901760, %v4875_v29  ;;  %v1432_v15 = vand.u32 4294901760, %v4880_v53  ;;  %v4910_v23 = vsub.f32 %v1326_v55, %v4888_v4  ;;  %v4922_v31 = vsub.f32 %v1325_v8, %v4902_v17  ;;  %v1320_v49 = vld [vmem:[#allocation2 + $0x48] sm:$0xff]  ;;  %v1319_v57 = vld [vmem:[#allocation2 + $0x40] sm:$0xff] }
 0x51a   :  { %v1439_v7 = vand.u32 4294901760, %v4883_v13  ;;  %v1446_v21 = vand.u32 4294901760, %v4899_v9  ;;  %v4934_v38 = vsub.f32 %v1324_v22, %v4914_v25  ;;  %v4938_v39 = vand.u32 4294901760, %v1322_v37  ;;  %v1318_v55 = vld [vmem:[#allocation2 + $0x28] sm:$0xff] }
 0x51b   :  { %3971 = vmatpush3.xpose.msra.mxu0 %v4865_v10  ;;  %v1426_v5 = vsub.f32 %v4875_v29, %v1425_v14  ;;  %v1433_v6 = vsub.f32 %v4880_v53, %v1432_v15  ;;  %v1453_v28 = vand.u32 4294901760, %v4910_v23  ;;  %v1460_v36 = vand.u32 4294901760, %v4922_v31 }
 0x51c   :  { %3972 = vmatprep.subr.mxu0 %v4671_v59  ;;  %v1440_v20 = vsub.f32 %v4883_v13, %v1439_v7  ;;  %v1447_v27 = vsub.f32 %v4899_v9, %v1446_v21  ;;  %v1467_v42 = vand.u32 4294901760, %v4934_v38  ;;  %v4946_v44 = vsub.f32 %v1323_v30, %v4926_v32 }
 0x51d   :  { %v1427_v16 = vand.u32 4294901760, %v1426_v5  ;;  %v1434_v18 = vand.u32 4294901760, %v1433_v6  ;;  %v1454_v34 = vsub.f32 %v4910_v23, %v1453_v28  ;;  %v1461_v41 = vsub.f32 %v4922_v31, %v1460_v36 }
 0x51e   :  { %v1441_v26 = vand.u32 4294901760, %v1440_v20  ;;  %v1448_v33 = vand.u32 4294901760, %v1447_v27  ;;  %v4950_v45 = vand.u32 4294901760, %v1321_v43  ;;  %v1468_v47 = vsub.f32 %v4934_v38, %v1467_v42  ;;  %v1317_v20 = vld [vmem:[#allocation2 + $0x20] sm:$0xff] }
 0x51f   :  { %3973 = vmatpush3.xpose.msra.mxu0 %v4867_v11  ;;  %4004 = vmatpush3.xpose.msra.mxu1 %v1427_v16  ;;  %v1455_v40 = vand.u32 4294901760, %v1454_v34  ;;  %v1462_v46 = vand.u32 4294901760, %v1461_v41  ;;  %v1474_v48 = vand.u32 4294901760, %v4946_v44  ;;  %v4958_v50 = vsub.f32 %v1322_v37, %v4938_v39  ;;  %v1316_v34 = vld [vmem:[#allocation2 + $0x8] sm:$0xff] }
 0x520   :  { %3974 = vmatprep.subr.mxu0 %v4671_v59  ;;  %4005 = vmatprep.subr.mxu1 %v4671_v59  ;;  %v4962_v51 = vand.u32 4294901760, %v1320_v49  ;;  %v1469_v52 = vand.u32 4294901760, %v1468_v47  ;;  %v4970_v58 = vsub.f32 %v1321_v43, %v4950_v45  ;;  %v4974_v60 = vand.u32 4294901760, %v1319_v57 }
 0x521   :  { %v1475_v54 = vsub.f32 %v4946_v44, %v1474_v48  ;;  %v1481_v56 = vand.u32 4294901760, %v4958_v50  ;;  %v4986_v6 = vand.u32 4294901760, %v1318_v55  ;;  %v5013_v41 = vand.u32 4294901760, %v4692_v1 }
 0x522   :  { %v1488_v12 = vand.u32 4294901760, %v4970_v58  ;;  %v4982_v5 = vsub.f32 %v1320_v49, %v4962_v51  ;;  %v4994_v22 = vsub.f32 %v1319_v57, %v4974_v60  ;;  %v1315_v49 = vld [vmem:[#allocation2] sm:$0xff] }
 0x523   :  { %3975 = vmatpush3.xpose.msra.mxu0 %v4877_v35  ;;  %4006 = vmatpush3.xpose.msra.mxu1 %v1434_v18  ;;  %v1476_v61 = vand.u32 4294901760, %v1475_v54  ;;  %v1482_v62 = vsub.f32 %v4958_v50, %v1481_v56  ;;  %v5006_v37 = vsub.f32 %v1318_v55, %v4986_v6  ;;  %v5025_v54 = vand.u32 4294901760, %v1315_v49 }
 0x524   :  { %3976 = vmatprep.subr.mxu0 %v4671_v59  ;;  %4007 = vmatprep.subr.mxu1 %v4671_v59  ;;  %v1489_v16 = vsub.f32 %v4970_v58, %v1488_v12  ;;  %v1495_v18 = vand.u32 4294901760, %v4982_v5  ;;  %v5029_v57 = vsub.f32 %v4692_v1, %v5013_v41 }
 0x525   :  { %v1483_v8 = vand.u32 4294901760, %v1482_v62  ;;  %v1509_v47 = vand.u32 4294901760, %v5006_v37 }
 0x526   :  { %v1490_v27 = vand.u32 4294901760, %v1489_v16  ;;  %v1496_v30 = vsub.f32 %v4982_v5, %v1495_v18  ;;  %v1414_v1 = vand.u32 4294901760, %v5029_v57 }
 0x527   :  { %3977 = vmatpush3.xpose.msra.mxu0 %v4888_v4  ;;  %4008 = vmatpush3.xpose.msra.mxu1 %v1441_v26  ;;  %v4998_v26 = vand.u32 4294901760, %v1317_v20  ;;  %v1510_v62 = vsub.f32 %v5006_v37, %v1509_v47 }
 0x528   :  { %3978 = vmatprep.subr.mxu0 %v4671_v59  ;;  %4009 = vmatprep.subr.mxu1 %v4671_v59  ;;  %v1497_v43 = vand.u32 4294901760, %v1496_v30  ;;  %v5048_v30 = vsub.f32 %v1315_v49, %v5025_v54 }
 0x529   :  { %v1511_v16 = vand.u32 4294901760, %v1510_v62 }
 0x52b   :  { %3979 = vmatpush3.xpose.msra.mxu0 %v4902_v17  ;;  %4010 = vmatpush3.xpose.msra.mxu1 %v1448_v33  ;;  %v1502_v33 = vand.u32 4294901760, %v4994_v22 }
 0x52c   :  { %3980 = vmatprep.subr.mxu0 %v4671_v59  ;;  %4011 = vmatprep.subr.mxu1 %v4671_v59 }
 0x52f   :  { %3981 = vmatpush3.xpose.msra.mxu0 %v4914_v25  ;;  %4012 = vmatpush3.xpose.msra.mxu1 %v1455_v40  ;;  %v5010_v40 = vand.u32 4294901760, %v1316_v34 }
 0x530   :  { %3982 = vmatprep.subr.mxu0 %v4671_v59  ;;  %4013 = vmatprep.subr.mxu1 %v4671_v59 }
 0x533   :  { %3983 = vmatpush3.xpose.msra.mxu0 %v4926_v32  ;;  %4014 = vmatpush3.xpose.msra.mxu1 %v1462_v46  ;;  %v1503_v46 = vsub.f32 %v4994_v22, %v1502_v33 }
 0x534   :  { %3984 = vmatprep.subr.mxu0 %v4671_v59  ;;  %4015 = vmatprep.subr.mxu1 %v4671_v59 }
 0x537   :  { %3985 = vmatpush3.xpose.msra.mxu0 %v4938_v39  ;;  %4016 = vmatpush3.xpose.msra.mxu1 %v1469_v52  ;;  %v5021_v52 = vsub.f32 %v1317_v20, %v4998_v26 }
 0x538   :  { %3986 = vmatprep.subr.mxu0 %v4671_v59  ;;  %4017 = vmatprep.subr.mxu1 %v4671_v59 }
 0x539   :  { %v1516_v55 = vand.u32 4294901760, %v5021_v52 }
 0x53b   :  { %3987 = vmatpush3.xpose.msra.mxu0 %v4950_v45  ;;  %4018 = vmatpush3.xpose.msra.mxu1 %v1476_v61  ;;  %v1504_v61 = vand.u32 4294901760, %v1503_v46  ;;  %v1517_v20 = vsub.f32 %v5021_v52, %v1516_v55 }
 0x53c   :  { %3988 = vmatprep.subr.mxu0 %v4671_v59  ;;  %4019 = vmatprep.subr.mxu1 %v4671_v59 }
 0x53f   :  { %3989 = vmatpush3.xpose.msra.mxu0 %v4962_v51  ;;  %4020 = vmatpush3.xpose.msra.mxu1 %v1483_v8  ;;  %v5037_v8 = vsub.f32 %v1316_v34, %v5010_v40  ;;  %v1415_v34 = vsub.f32 %v5029_v57, %v1414_v1 }
 0x540   :  { %3990 = vmatprep.subr.mxu0 %v4671_v59  ;;  %4021 = vmatprep.subr.mxu1 %v4671_v59 }
 0x541   :  { %v1416_v49 = vand.u32 4294901760, %v1415_v34 }
 0x543   :  { %3991 = vmatpush3.xpose.msra.mxu0 %v4974_v60  ;;  %4022 = vmatpush3.xpose.msra.mxu1 %v1490_v27  ;;  %v1523_v27 = vand.u32 4294901760, %v5037_v8 }
 0x544   :  { %3992 = vmatprep.subr.mxu0 %v4671_v59  ;;  %4023 = vmatprep.subr.mxu1 %v4671_v59 }
 0x545   :  { %v1524_v46 = vsub.f32 %v5037_v8, %v1523_v27 }
 0x547   :  { %3993 = vmatpush3.xpose.msra.mxu0 %v4986_v6  ;;  %4024 = vmatpush3.xpose.msra.mxu1 %v1497_v43  ;;  %v1518_v43 = vand.u32 4294901760, %v1517_v20  ;;  %v1525_v62 = vand.u32 4294901760, %v1524_v46 }
 0x548   :  { %3994 = vmatprep.subr.mxu0 %v4671_v59  ;;  %4025 = vmatprep.subr.mxu1 %v4671_v59 }
 0x54b   :  { %3995 = vmatpush3.xpose.msra.mxu0 %v4998_v26  ;;  %4026 = vmatpush3.xpose.msra.mxu1 %v1504_v61  ;;  %v1530_v61 = vand.u32 4294901760, %v5048_v30 }
 0x54c   :  { %3996 = vmatprep.subr.mxu0 %v4671_v59  ;;  %4027 = vmatprep.subr.mxu1 %v4671_v59 }
 0x54f   :  { %3997 = vmatpush3.xpose.msra.mxu0 %v5010_v40  ;;  %4028 = vmatpush3.xpose.msra.mxu1 %v1511_v16  ;;  %v1531_v16 = vsub.f32 %v5048_v30, %v1530_v61 }
 0x550   :  { %3998 = vmatprep.subr.mxu0 %v4671_v59  ;;  %4029 = vmatprep.subr.mxu1 %v4671_v59 }
 0x551   :  { %v1532_v20 = vand.u32 4294901760, %v1531_v16 }
 0x553   :  { %3999 = vmatpush3.xpose.msra.mxu0 %v5025_v54  ;;  %4030 = vmatpush3.xpose.msra.mxu1 %v1518_v43  ;;  %v2446_v43 = vld [vmem:[#allocation2 + $0x90] sm:$0xff] }
 0x554   :  { %4031 = vmatprep.subr.mxu1 %v4671_v59  ;;  %4038 = vmatprep.subr.mxu0 %v4671_v59 }
 0x556   :  { %4001 = vmatmul.mubr.f32.vlgmr.msra.gmra.mxu0 %v1416_v49 }
 0x557   :  { %4032 = vmatpush3.xpose.msra.mxu1 %v1525_v62  ;;  %4039 = vmatpush3.xpose.msra.mxu0 %v4875_v29  ;;  %v1301_v29 = vand.u32 15, %v4700_v3  ;;  %v5397_v62 = vand.u32 4294901760, %v2446_v43 }
 0x558   :  { %4033 = vmatprep.subr.mxu1 %v4671_v59  ;;  %4040 = vmatprep.subr.mxu0 %v4671_v59 }
 0x559   :  { %4070 = vmatprep.mubr.msk.f32.mxu0 %vm4672_vm6, %v4671_v59 }
 0x55b   :  { %4034 = vmatpush3.xpose.msra.mxu1 %v1532_v20  ;;  %4041 = vmatpush3.xpose.msra.mxu0 %v4880_v53  ;;  %v2445_v20 = vld [vmem:[#allocation2 + $0x78] sm:$0xff] }
 0x55c   :  { %4042 = vmatprep.subr.mxu0 %v4671_v59  ;;  %4073 = vmatprep.subr.mxu1 %v4671_v59 }
 0x55e   :  { %4036 = vmatmul.mubr.f32.vlgmr.msra.gmra.mxu1 %v5013_v41 }
 0x55f   :  { %4043 = vmatpush3.xpose.msra.mxu0 %v4883_v13  ;;  %4074 = vmatpush3.xpose.msra.mxu1 %v4863_v63 }
 0x560   :  { %4044 = vmatprep.subr.mxu0 %v4671_v59  ;;  %4075 = vmatprep.subr.mxu1 %v4671_v59 }
 0x561   :  { %4105 = vmatprep.mubr.msk.f32.mxu1 %vm4672_vm6, %v4671_v59 }
 0x563   :  { %4045 = vmatpush3.xpose.msra.mxu0 %v4899_v9  ;;  %4076 = vmatpush3.xpose.msra.mxu1 %v4865_v10 }
 0x564   :  { %4046 = vmatprep.subr.mxu0 %v4671_v59  ;;  %4077 = vmatprep.subr.mxu1 %v4671_v59 }
 0x567   :  { %4047 = vmatpush3.xpose.msra.mxu0 %v4910_v23  ;;  %4078 = vmatpush3.xpose.msra.mxu1 %v4867_v11  ;;  %v5766_v23 = vmov 1.0  }
 0x568   :  { %4048 = vmatprep.subr.mxu0 %v4671_v59  ;;  %4079 = vmatprep.subr.mxu1 %v4671_v59 }
 0x56b   :  { %4049 = vmatpush3.xpose.msra.mxu0 %v4922_v31  ;;  %4080 = vmatpush3.xpose.msra.mxu1 %v4877_v35 }
 0x56c   :  { %4050 = vmatprep.subr.mxu0 %v4671_v59  ;;  %4081 = vmatprep.subr.mxu1 %v4671_v59 }
 0x56f   :  { %4051 = vmatpush3.xpose.msra.mxu0 %v4934_v38  ;;  %4082 = vmatpush3.xpose.msra.mxu1 %v4888_v4 }
 0x570   :  { %4052 = vmatprep.subr.mxu0 %v4671_v59  ;;  %4083 = vmatprep.subr.mxu1 %v4671_v59 }
 0x573   :  { %4053 = vmatpush3.xpose.msra.mxu0 %v4946_v44  ;;  %4084 = vmatpush3.xpose.msra.mxu1 %v4902_v17 }
 0x574   :  { %4054 = vmatprep.subr.mxu0 %v4671_v59  ;;  %4085 = vmatprep.subr.mxu1 %v4671_v59 }
 0x577   :  { %4055 = vmatpush3.xpose.msra.mxu0 %v4958_v50  ;;  %4086 = vmatpush3.xpose.msra.mxu1 %v4914_v25 }
 0x578   :  { %4056 = vmatprep.subr.mxu0 %v4671_v59  ;;  %4087 = vmatprep.subr.mxu1 %v4671_v59 }
 0x57b   :  { %4057 = vmatpush3.xpose.msra.mxu0 %v4970_v58  ;;  %4088 = vmatpush3.xpose.msra.mxu1 %v4926_v32 }
 0x57c   :  { %4058 = vmatprep.subr.mxu0 %v4671_v59  ;;  %4089 = vmatprep.subr.mxu1 %v4671_v59 }
 0x57f   :  { %4059 = vmatpush3.xpose.msra.mxu0 %v4982_v5  ;;  %4090 = vmatpush3.xpose.msra.mxu1 %v4938_v39 }
 0x580   :  { %4060 = vmatprep.subr.mxu0 %v4671_v59  ;;  %4091 = vmatprep.subr.mxu1 %v4671_v59 }
 0x583   :  { %4061 = vmatpush3.xpose.msra.mxu0 %v4994_v22  ;;  %4092 = vmatpush3.xpose.msra.mxu1 %v4950_v45 }
 0x584   :  { %4062 = vmatprep.subr.mxu0 %v4671_v59  ;;  %4093 = vmatprep.subr.mxu1 %v4671_v59 }
 0x587   :  { %4063 = vmatpush3.xpose.msra.mxu0 %v5006_v37  ;;  %4094 = vmatpush3.xpose.msra.mxu1 %v4962_v51 }
 0x588   :  { %4064 = vmatprep.subr.mxu0 %v4671_v59  ;;  %4095 = vmatprep.subr.mxu1 %v4671_v59 }
 0x58b   :  { %4065 = vmatpush3.xpose.msra.mxu0 %v5021_v52  ;;  %4096 = vmatpush3.xpose.msra.mxu1 %v4974_v60 }
 0x58c   :  { %4066 = vmatprep.subr.mxu0 %v4671_v59  ;;  %4097 = vmatprep.subr.mxu1 %v4671_v59 }
 0x58f   :  { %4067 = vmatpush3.xpose.msra.mxu0 %v5037_v8  ;;  %4098 = vmatpush3.xpose.msra.mxu1 %v4986_v6 }
 0x590   :  { %4068 = vmatprep.subr.mxu0 %v4671_v59  ;;  %4099 = vmatprep.subr.mxu1 %v4671_v59 }
 0x593   :  { %4069 = vmatpush3.xpose.msra.mxu0 %v5048_v30  ;;  %4100 = vmatpush3.xpose.msra.mxu1 %v4998_v26 }
 0x594   :  { %4101 = vmatprep.subr.mxu1 %v4671_v59  ;;  %4108 = vmatprep.subr.mxu0 %v4671_v59 }
 0x596   :  { %4071 = vmatmul.mubr.f32.vlgmr.msra.gmra.mxu0 %v5029_v57 }
 0x597   :  { %4102 = vmatpush3.xpose.msra.mxu1 %v5010_v40  ;;  %4109 = vmatpush3.xpose.msra.mxu0 %v1425_v14 }
 0x598   :  { %4103 = vmatprep.subr.mxu1 %v4671_v59  ;;  %4110 = vmatprep.subr.mxu0 %v4671_v59 }
 0x599   :  { %4140 = vmatprep.mubr.msk.f32.mxu0 %vm4672_vm6, %v4671_v59 }
 0x59b   :  { %4104 = vmatpush3.xpose.msra.mxu1 %v5025_v54  ;;  %4111 = vmatpush3.xpose.msra.mxu0 %v1432_v15 }
 0x59c   :  { %4112 = vmatprep.subr.mxu0 %v4671_v59  ;;  %4143 = vmatprep.subr.mxu1 %v4671_v59 }
 0x59e   :  { %4106 = vmatmul.mubr.f32.vlgmr.msra.gmra.mxu1 %v1414_v1 }
 0x59f   :  { %4113 = vmatpush3.xpose.msra.mxu0 %v1439_v7  ;;  %4144 = vmatpush3.xpose.msra.mxu1 %v4863_v63  ;;  %v1295_v63 = vshrl.u32 %v12_v0, 7 }
 0x5a0   :  { %4114 = vmatprep.subr.mxu0 %v4671_v59  ;;  %4145 = vmatprep.subr.mxu1 %v4671_v59 }
 0x5a1   :  { %4175 = vmatprep.mubr.msk.f32.mxu1 %vm4672_vm6, %v4671_v59  ;;  %vm5223_vm9 = vcmp.eq.s32.totalorder %v1295_v63, %v1301_v29 }
 0x5a2   :  { %v3617_v14 = vsel %vm5223_vm9, 1.0, %v4671_v59 }
 0x5a3   :  { %4115 = vmatpush3.xpose.msra.mxu0 %v1446_v21  ;;  %4146 = vmatpush3.xpose.msra.mxu1 %v4865_v10  ;;  %v1974_v10 = vsel %vm1972_vm7, %v5775_v19, 0 }
 0x5a4   :  { %4116 = vmatprep.subr.mxu0 %v4671_v59  ;;  %4147 = vmatprep.subr.mxu1 %v4671_v59 }
 0x5a7   :  { %4117 = vmatpush3.xpose.msra.mxu0 %v1453_v28  ;;  %4148 = vmatpush3.xpose.msra.mxu1 %v4867_v11  ;;  %v1296_v11 = vadd.s32 8, %v1295_v63  ;;  %v2453_v28 = vld [vmem:[#allocation2 + $0xf8] sm:$0xff] }
 0x5a8   :  { %4118 = vmatprep.subr.mxu0 %v4671_v59  ;;  %4149 = vmatprep.subr.mxu1 %v4671_v59 }
 0x5a9   :  { %vm5213_vm8 = vcmp.eq.s32.totalorder %v1296_v11, %v1301_v29  ;;  %v5405_v11 = vsub.f32 %v2446_v43, %v5397_v62 }
 0x5aa   :  { %v3618_v53 = vsel %vm5213_vm8, 1.0, %v4671_v59 }
 0x5ab   :  { %4119 = vmatpush3.xpose.msra.mxu0 %v1460_v36  ;;  %4150 = vmatpush3.xpose.msra.mxu1 %v4877_v35  ;;  %v5206_v35 = vand.u32 4294901760, %v1974_v10  ;;  %v5239_v15 = vsub.f32 %v3618_v53, %v3618_v53  ;;  %v2452_v36 = vld [vmem:[#allocation2 + $0xf0] sm:$0xff] }
 0x5ac   :  { %4120 = vmatprep.subr.mxu0 %v4671_v59  ;;  %4151 = vmatprep.subr.mxu1 %v4671_v59 }
 0x5ad   :  { %v5218_v19 = vsub.f32 %v1974_v10, %v5206_v35  ;;  %v5252_v9 = vand.u32 4294901760, %v5239_v15 }
 0x5af   :  { %4121 = vmatpush3.xpose.msra.mxu0 %v1467_v42  ;;  %4152 = vmatpush3.xpose.msra.mxu1 %v4888_v4  ;;  %v2045_v13 = vand.u32 4294901760, %v5218_v19  ;;  %v5243_v4 = vsub.f32 %v3617_v14, %v3617_v14  ;;  %v5289_v42 = vand.u32 4294901760, %v2452_v36 }
 0x5b0   :  { %4122 = vmatprep.subr.mxu0 %v4671_v59  ;;  %4153 = vmatprep.subr.mxu1 %v4671_v59 }
 0x5b1   :  { %v2046_v7 = vsub.f32 %v5218_v19, %v2045_v13 }
 0x5b3   :  { %4123 = vmatpush3.xpose.msra.mxu0 %v1474_v48  ;;  %4154 = vmatpush3.xpose.msra.mxu1 %v4902_v17  ;;  %v5257_v17 = vand.u32 4294901760, %v5243_v4  ;;  %v2047_v21 = vand.u32 4294901760, %v2046_v7  ;;  %v5303_v48 = vsub.f32 %v2452_v36, %v5289_v42 }
 0x5b4   :  { %4124 = vmatprep.subr.mxu0 %v4671_v59  ;;  %4155 = vmatprep.subr.mxu1 %v4671_v59 }
 0x5b5   :  { %v2092_v31 = vsub.f32 %v5243_v4, %v5257_v17  ;;  %v2555_v58 = vand.u32 4294901760, %v5303_v48 }
 0x5b7   :  { %4125 = vmatpush3.xpose.msra.mxu0 %v1481_v56  ;;  %4156 = vmatpush3.xpose.msra.mxu1 %v4914_v25  ;;  %v2085_v25 = vsub.f32 %v5239_v15, %v5252_v9  ;;  %v2450_v56 = vld [vmem:[#allocation2 + $0xd0] sm:$0xff] }
 0x5b8   :  { %4126 = vmatprep.subr.mxu0 %v4671_v59  ;;  %4157 = vmatprep.subr.mxu1 %v4671_v59  ;;  %v5329_v5 = vand.u32 4294901760, %v2450_v56 }
 0x5b9   :  { %v5280_v38 = vand.u32 4294901760, %v2085_v25  ;;  %v2443_v25 = vld [vmem:[#allocation2 + $0x58] sm:$0xff] }
 0x5bb   :  { %4127 = vmatpush3.xpose.msra.mxu0 %v1488_v12  ;;  %4158 = vmatpush3.xpose.msra.mxu1 %v4926_v32  ;;  %v5276_v32 = vand.u32 4294901760, %v2453_v28 }
 0x5bc   :  { %4128 = vmatprep.subr.mxu0 %v4671_v59  ;;  %4159 = vmatprep.subr.mxu1 %v4671_v59 }
 0x5bd   :  { %v5294_v44 = vsub.f32 %v2453_v28, %v5276_v32 }
 0x5bf   :  { %4129 = vmatpush3.xpose.msra.mxu0 %v1495_v18  ;;  %4160 = vmatpush3.xpose.msra.mxu1 %v4938_v39  ;;  %v5287_v39 = vand.u32 4294901760, %v2092_v31  ;;  %v2556_v18 = vsub.f32 %v5303_v48, %v2555_v58 }
 0x5c0   :  { %4130 = vmatprep.subr.mxu0 %v4671_v59  ;;  %4161 = vmatprep.subr.mxu1 %v4671_v59 }
 0x5c3   :  { %4131 = vmatpush3.xpose.msra.mxu0 %v1502_v33  ;;  %4162 = vmatpush3.xpose.msra.mxu1 %v4950_v45  ;;  %v2451_v45 = vld [vmem:[#allocation2 + $0xd8] sm:$0xff] }
 0x5c4   :  { %4132 = vmatprep.subr.mxu0 %v4671_v59  ;;  %4163 = vmatprep.subr.mxu1 %v4671_v59  ;;  %v5308_v50 = vand.u32 4294901760, %v2451_v45 }
 0x5c7   :  { %4133 = vmatpush3.xpose.msra.mxu0 %v1509_v47  ;;  %4164 = vmatpush3.xpose.msra.mxu1 %v4962_v51  ;;  %v2548_v51 = vand.u32 4294901760, %v5294_v44 }
 0x5c8   :  { %4134 = vmatprep.subr.mxu0 %v4671_v59  ;;  %4165 = vmatprep.subr.mxu1 %v4671_v59 }
 0x5c9   :  { %v2549_v12 = vsub.f32 %v5294_v44, %v2548_v51 }
 0x5cb   :  { %4135 = vmatpush3.xpose.msra.mxu0 %v1516_v55  ;;  %4166 = vmatpush3.xpose.msra.mxu1 %v4974_v60  ;;  %v5324_v60 = vsub.f32 %v2451_v45, %v5308_v50  ;;  %v2550_v22 = vand.u32 4294901760, %v2549_v12  ;;  %v2447_v55 = vld [vmem:[#allocation2 + $0x98] sm:$0xff]  ;;  %v5433_v45 = vand.u32 4294901760, %v2443_v25  ;;  %v2442_v12 = vld [vmem:[#allocation2 + $0x50] sm:$0xff] }
 0x5cc   :  { %4136 = vmatprep.subr.mxu0 %v4671_v59  ;;  %4167 = vmatprep.subr.mxu1 %v4671_v59  ;;  %v5378_v8 = vand.u32 4294901760, %v2447_v55 }
 0x5cd   :  { %v2562_v37 = vand.u32 4294901760, %v5324_v60 }
 0x5ce   :  { %v5391_v46 = vsub.f32 %v2447_v55, %v5378_v8 }
 0x5cf   :  { %4137 = vmatpush3.xpose.msra.mxu0 %v1523_v27  ;;  %4168 = vmatpush3.xpose.msra.mxu1 %v4986_v6  ;;  %v2449_v6 = vld [vmem:[#allocation2 + $0xb8] sm:$0xff]  ;;  %v2563_v52 = vsub.f32 %v5324_v60, %v2562_v37 }
 0x5d0   :  { %4138 = vmatprep.subr.mxu0 %v4671_v59  ;;  %4169 = vmatprep.subr.mxu1 %v4671_v59  ;;  %v5351_v33 = vand.u32 4294901760, %v2449_v6  ;;  %v2590_v63 = vand.u32 4294901760, %v5391_v46 }
 0x5d1   :  { %v2564_v1 = vand.u32 4294901760, %v2563_v52  ;;  %v2441_v52 = vld [vmem:[#allocation2 + $0x38] sm:$0xff] }
 0x5d2   :  { %v5366_v47 = vsub.f32 %v2449_v6, %v5351_v33  ;;  %v2591_v53 = vsub.f32 %v5391_v46, %v2590_v63  ;;  %v5438_v6 = vand.u32 4294901760, %v2442_v12  ;;  %v5457_v43 = vand.u32 4294901760, %v2441_v52 }
 0x5d3   :  { %4139 = vmatpush3.xpose.msra.mxu0 %v1530_v61  ;;  %4170 = vmatpush3.xpose.msra.mxu1 %v4998_v26  ;;  %v5349_v26 = vsub.f32 %v2450_v56, %v5329_v5 }
 0x5d4   :  { %4171 = vmatprep.subr.mxu1 %v4671_v59  ;;  %4178 = vmatprep.subr.mxu0 %v4671_v59  ;;  %v2576_v34 = vand.u32 4294901760, %v5366_v47  ;;  %v2592_v28 = vand.u32 4294901760, %v2591_v53  ;;  %v5451_v55 = vsub.f32 %v2442_v12, %v5438_v6 }
 0x5d5   :  { %v2569_v57 = vand.u32 4294901760, %v5349_v26 }
 0x5d6   :  { %4141 = vmatmul.mubr.f32.vlgmr.msra.gmra.mxu0 %v5013_v41  ;;  %v2577_v49 = vsub.f32 %v5366_v47, %v2576_v34 }
 0x5d7   :  { %4172 = vmatpush3.xpose.msra.mxu1 %v5010_v40  ;;  %4179 = vmatpush3.msk.msra.mxu0 %vm5213_vm8, %v5766_v23  ;;  %v2448_v40 = vld [vmem:[#allocation2 + $0xb0] sm:$0xff]  ;;  %v2570_v30 = vsub.f32 %v5349_v26, %v2569_v57 }
 0x5d8   :  { %4180 = vmatprep.subr.mxu0 %v4671_v59  ;;  %4173 = vmatprep.subr.mxu1 %v4671_v59  ;;  %v2578_v10 = vand.u32 4294901760, %v2577_v49  ;;  %v2440_v49 = vld [vmem:[#allocation2 + $0x30] sm:$0xff] }
 0x5d9   :  { %4181 = vmatpush3.msk.msra.mxu0 %vm5223_vm9, %v5766_v23  ;;  %4182 = vmatprep.mubr.msk.f32.mxu0 %vm4672_vm6, %v4671_v59  ;;  %v2571_v61 = vand.u32 4294901760, %v2570_v30  ;;  %v5470_v53 = vand.u32 4294901760, %v2440_v49 }
 0x5da   :  { %4192 = vmatprep.subr.mxu0 %v4671_v59  ;;  %4183 = vmatmul.mubr.f32.vlgmr.msra.gmra.mxu0 %v2047_v21  ;;  %v5774_v21 = vand.u32 4294901760, %v5405_v11 }
 0x5db   :  { %4174 = vmatpush3.xpose.msra.mxu1 %v5025_v54  ;;  %4193 = vmatpush3.msra.mxu0 %v5239_v15  ;;  %v5371_v54 = vand.u32 4294901760, %v2448_v40  ;;  %v5482_v12 = vsub.f32 %v2440_v49, %v5470_v53 }
 0x5dc   :  { %4194 = vmatprep.subr.mxu0 %v4671_v59  ;;  %4185 = vmatprep.subr.mxu1 %v4671_v59  ;;  %v2598_v36 = vsub.f32 %v5405_v11, %v5774_v21 }
 0x5dd   :  { %4195 = vmatpush3.msra.mxu0 %v5243_v4  ;;  %4196 = vmatprep.mubr.msk.f32.mxu0 %vm4672_vm6, %v4671_v59  ;;  %v5382_v27 = vsub.f32 %v2448_v40, %v5371_v54 }
 0x5de   :  { %4176 = vmatmul.mubr.f32.vlgmr.msra.gmra.mxu1 %v5013_v41  ;;  %4206 = vmatprep.subr.mxu0 %v4671_v59  ;;  %v2557_v41 = vand.u32 4294901760, %v2556_v18  ;;  %v2599_v18 = vand.u32 4294901760, %v2598_v36 }
 0x5df   :  { %4186 = vmatpush3.msra.mxu1 %v5280_v38  ;;  %4197 = vmatmul.mubr.f32.vlgmr.msra.gmra.mxu0 %v5218_v19  ;;  %v2583_v16 = vand.u32 4294901760, %v5382_v27  ;;  %v2444_v19 = vld [vmem:[#allocation2 + $0x70] sm:$0xff] }
 0x5e0   :  { %4207 = vmatpush3.msra.mxu0 %v5252_v9  ;;  %4187 = vmatprep.subr.mxu1 %v4671_v59  ;;  %v5421_v7 = vand.u32 4294901760, %v2444_v19 }
 0x5e1   :  { %4208 = vmatprep.subr.mxu0 %v4671_v59  ;;  %4188 = vmatpush3.msra.mxu1 %v5287_v39  ;;  %v2584_v29 = vsub.f32 %v5382_v27, %v2583_v16 }
 0x5e2   :  { %4189 = vmatprep.mubr.msk.f32.mxu1 %vm4672_vm6, %v4671_v59  ;;  %4209 = vmatpush3.msra.mxu0 %v5257_v17  ;;  %v5428_v31 = vsub.f32 %v2444_v19, %v5421_v7 }
 0x5e3   :  { %4190 = vmatmul.mubr.f32.vlgmr.msra.gmra.mxu1 %v5206_v35  ;;  %4199 = vmatprep.subr.mxu1 %v4671_v59 }
 0x5e4   :  { %4210 = vmatprep.mubr.msk.f32.mxu0 %vm4672_vm6, %v4671_v59  ;;  %4220 = vmatprep.subr.mxu0 %v4671_v59 }
 0x5e5   :  { %4200 = vmatpush3.msk.msra.mxu1 %vm5213_vm8, %v5766_v23  ;;  %4211 = vmatmul.mubr.f32.vlgmr.msra.gmra.mxu0 %v5206_v35 }
 0x5e6   :  { %4221 = vmatpush3.xpose.msra.mxu0 %v5276_v32  ;;  %4201 = vmatprep.subr.mxu1 %v4671_v59 }
 0x5e7   :  { %4202 = vmatpush3.msk.msra.mxu1 %vm5223_vm9, %v5766_v23  ;;  %4203 = vmatprep.mubr.msk.f32.mxu1 %vm4672_vm6, %v4671_v59 }
 0x5e8   :  { %4204 = vmatmul.mubr.f32.vlgmr.msra.gmra.mxu1 %v2045_v13  ;;  %4213 = vmatprep.subr.mxu1 %v4671_v59  ;;  %v2585_v13 = vand.u32 4294901760, %v2584_v29  ;;  %v5465_v29 = vsub.f32 %v2441_v52, %v5457_v43  ;;  %v2438_v52 = vld [vmem:[#allocation2 + $0x10] sm:$0xff] }
 0x5e9   :  { %4222 = vmatprep.subr.mxu0 %v4671_v59  ;;  %4214 = vmatpush3.msk.msra.mxu1 %vm5213_vm8, %v5766_v23 }
 0x5ea   :  { %4223 = vmatpush3.xpose.msra.mxu0 %v5289_v42  ;;  %4215 = vmatprep.subr.mxu1 %v4671_v59 }
 0x5eb   :  { %4216 = vmatpush3.msk.msra.mxu1 %vm5223_vm9, %v5766_v23  ;;  %4217 = vmatprep.mubr.msk.f32.mxu1 %vm4672_vm6, %v4671_v59  ;;  %v5500_v23 = vand.u32 4294901760, %v2438_v52 }
 0x5ec   :  { %4218 = vmatmul.mubr.f32.vlgmr.msra.gmra.mxu1 %v5206_v35  ;;  %4224 = vmatprep.subr.mxu0 %v4671_v59  ;;  %v5410_v35 = vand.u32 4294901760, %v2445_v20 }
 0x5ed   :  { %4255 = vmatprep.subr.mxu1 %v4671_v59  ;;  %4252 = vmatprep.mubr.msk.f32.mxu0 %vm4672_vm6, %v4671_v59 }
 0x5ee   :  { %4225 = vmatpush3.xpose.msra.mxu0 %v5308_v50  ;;  %4256 = vmatpush3.xpose.msra.mxu1 %v2550_v22  ;;  %v5419_v14 = vsub.f32 %v2445_v20, %v5410_v35  ;;  %v5442_v22 = vsub.f32 %v2443_v25, %v5433_v45  ;;  %v5768_v20 = vand.u32 4294901760, %v5451_v55 }
 0x5ef   :  { %4226 = vmatprep.subr.mxu0 %v4671_v59  ;;  %4257 = vmatprep.subr.mxu1 %v4671_v59 }
 0x5f0   :  { %4287 = vmatprep.mubr.msk.f32.mxu1 %vm4672_vm6, %v4671_v59  ;;  %v5773_v56 = vand.u32 4294901760, %v5419_v14  ;;  %v2626_v25 = vsub.f32 %v5451_v55, %v5768_v20  ;;  %v5771_v20 = vand.u32 4294901760, %v5482_v12 }
 0x5f2   :  { %4227 = vmatpush3.xpose.msra.mxu0 %v5329_v5  ;;  %4258 = vmatpush3.xpose.msra.mxu1 %v2557_v41  ;;  %v2605_v40 = vsub.f32 %v5419_v14, %v5773_v56  ;;  %v5772_v41 = vand.u32 4294901760, %v5428_v31 }
 0x5f3   :  { %4228 = vmatprep.subr.mxu0 %v4671_v59  ;;  %4259 = vmatprep.subr.mxu1 %v4671_v59 }
 0x5f4   :  { %v2612_v30 = vsub.f32 %v5428_v31, %v5772_v41 }
 0x5f6   :  { %4229 = vmatpush3.xpose.msra.mxu0 %v5351_v33  ;;  %4260 = vmatpush3.xpose.msra.mxu1 %v2564_v1  ;;  %v2606_v1 = vand.u32 4294901760, %v2605_v40  ;;  %v5769_v40 = vand.u32 4294901760, %v5465_v29 }
 0x5f7   :  { %4230 = vmatprep.subr.mxu0 %v4671_v59  ;;  %4261 = vmatprep.subr.mxu1 %v4671_v59 }
 0x5fa   :  { %4231 = vmatpush3.xpose.msra.mxu0 %v5371_v54  ;;  %4262 = vmatpush3.xpose.msra.mxu1 %v2571_v61  ;;  %v5770_v61 = vand.u32 4294901760, %v5442_v22 }
 0x5fb   :  { %4232 = vmatprep.subr.mxu0 %v4671_v59  ;;  %4263 = vmatprep.subr.mxu1 %v4671_v59 }
 0x5fc   :  { %v2619_v19 = vsub.f32 %v5442_v22, %v5770_v61 }
 0x5fe   :  { %4233 = vmatpush3.xpose.msra.mxu0 %v5378_v8  ;;  %4264 = vmatpush3.xpose.msra.mxu1 %v2578_v10  ;;  %v2613_v10 = vand.u32 4294901760, %v2612_v30  ;;  %v2620_v36 = vand.u32 4294901760, %v2619_v19  ;;  %v2633_v19 = vsub.f32 %v5465_v29, %v5769_v40  ;;  %v2640_v40 = vsub.f32 %v5482_v12, %v5771_v20 }
 0x5ff   :  { %4234 = vmatprep.subr.mxu0 %v4671_v59  ;;  %4265 = vmatprep.subr.mxu1 %v4671_v59 }
 0x602   :  { %4235 = vmatpush3.xpose.msra.mxu0 %v5397_v62  ;;  %4266 = vmatpush3.xpose.msra.mxu1 %v2585_v13  ;;  %v2439_v13 = vld [vmem:[#allocation2 + $0x18] sm:$0xff] }
 0x603   :  { %4236 = vmatprep.subr.mxu0 %v4671_v59  ;;  %4267 = vmatprep.subr.mxu1 %v4671_v59 }
 0x606   :  { %4237 = vmatpush3.xpose.msra.mxu0 %v5410_v35  ;;  %4268 = vmatpush3.xpose.msra.mxu1 %v2592_v28  ;;  %v5478_v28 = vand.u32 4294901760, %v4697_v2 }
 0x607   :  { %4238 = vmatprep.subr.mxu0 %v4671_v59  ;;  %4269 = vmatprep.subr.mxu1 %v4671_v59 }
 0x608   :  { %v5491_v30 = vsub.f32 %v4697_v2, %v5478_v28 }
 0x60a   :  { %4239 = vmatpush3.xpose.msra.mxu0 %v5421_v7  ;;  %4270 = vmatpush3.xpose.msra.mxu1 %v2599_v18  ;;  %v5484_v18 = vand.u32 4294901760, %v2439_v13 }
 0x60b   :  { %4240 = vmatprep.subr.mxu0 %v4671_v59  ;;  %4271 = vmatprep.subr.mxu1 %v4671_v59 }
 0x60c   :  { %v5495_v49 = vsub.f32 %v2439_v13, %v5484_v18  ;;  %v2634_v13 = vand.u32 4294901760, %v2633_v19 }
 0x60e   :  { %4241 = vmatpush3.xpose.msra.mxu0 %v5433_v45  ;;  %4272 = vmatpush3.xpose.msra.mxu1 %v2606_v1  ;;  %v2627_v1 = vand.u32 4294901760, %v2626_v25  ;;  %v2537_v25 = vand.u32 4294901760, %v5491_v30  ;;  %v2646_v61 = vand.u32 4294901760, %v5495_v49 }
 0x60f   :  { %4242 = vmatprep.subr.mxu0 %v4671_v59  ;;  %4273 = vmatprep.subr.mxu1 %v4671_v59 }
 0x610   :  { %v2647_v19 = vsub.f32 %v5495_v49, %v2646_v61 }
 0x612   :  { %4243 = vmatpush3.xpose.msra.mxu0 %v5438_v6  ;;  %4274 = vmatpush3.xpose.msra.mxu1 %v2613_v10 }
 0x613   :  { %4244 = vmatprep.subr.mxu0 %v4671_v59  ;;  %4275 = vmatprep.subr.mxu1 %v4671_v59 }
 0x616   :  { %4245 = vmatpush3.xpose.msra.mxu0 %v5457_v43  ;;  %4276 = vmatpush3.xpose.msra.mxu1 %v2620_v36  ;;  %v1418_v10 = vpop.f32.mrf.mxu0  ;;  %v5508_v36 = vsub.f32 %v2438_v52, %v5500_v23  ;;  %v2641_v52 = vand.u32 4294901760, %v2640_v40 }
 0x617   :  { %4246 = vmatprep.subr.mxu0 %v4671_v59  ;;  %4277 = vmatprep.subr.mxu1 %v4671_v59 }
 0x618   :  { %v4002_v2 = vpop.f32.mrf.mxu0  ;;  %v2653_v20 = vand.u32 4294901760, %v5508_v36 }
 0x619   :  { %v2538_v2 = vsub.f32 %v5491_v30, %v2537_v25 }
 0x61a   :  { %4247 = vmatpush3.xpose.msra.mxu0 %v5470_v53  ;;  %4278 = vmatpush3.xpose.msra.mxu1 %v2627_v1  ;;  %v2654_v40 = vsub.f32 %v5508_v36, %v2653_v20 }
 0x61b   :  { %4248 = vmatprep.subr.mxu0 %v4671_v59  ;;  %4279 = vmatprep.subr.mxu1 %v4671_v59  ;;  %v2539_v21 = vand.u32 4294901760, %v2538_v2 }
 0x61e   :  { %4249 = vmatpush3.xpose.msra.mxu0 %v5484_v18  ;;  %4280 = vmatpush3.xpose.msra.mxu1 %v2634_v13  ;;  %v1569_v1 = vpop.f32.mrf.mxu1  ;;  %v2648_v13 = vand.u32 4294901760, %v2647_v19 }
 0x61f   :  { %v5524_v41 = vadd.f32 %v1569_v1, %v1418_v10  ;;  %4250 = vmatprep.subr.mxu0 %v4671_v59  ;;  %4281 = vmatprep.subr.mxu1 %v4671_v59  ;;  %v2655_v10 = vand.u32 4294901760, %v2654_v40 }
 0x620   :  { %v4037_v56 = vpop.f32.mrf.mxu1 }
 0x622   :  { %4251 = vmatpush3.xpose.msra.mxu0 %v5500_v23  ;;  %4282 = vmatpush3.xpose.msra.mxu1 %v2641_v52 }
 0x623   :  { %4283 = vmatprep.subr.mxu1 %v4671_v59  ;;  %4290 = vmatprep.subr.mxu0 %v4671_v59 }
 0x625   :  { %4253 = vmatmul.mubr.f32.vlgmr.msra.gmra.mxu0 %v2539_v21 }
 0x626   :  { %4284 = vmatpush3.xpose.msra.mxu1 %v2648_v13  ;;  %4291 = vmatpush3.xpose.msra.mxu0 %v5294_v44  ;;  %v5785_v44 = vand.u32 4294901760, %v5428_v31 }
 0x627   :  { %4285 = vmatprep.subr.mxu1 %v4671_v59  ;;  %4292 = vmatprep.subr.mxu0 %v4671_v59 }
 0x628   :  { %4322 = vmatprep.mubr.msk.f32.mxu0 %vm4672_vm6, %v4671_v59 }
 0x62a   :  { %4286 = vmatpush3.xpose.msra.mxu1 %v2655_v10  ;;  %4293 = vmatpush3.xpose.msra.mxu0 %v5303_v48  ;;  %v5786_v48 = vand.u32 4294901760, %v5442_v22 }
 0x62b   :  { %4294 = vmatprep.subr.mxu0 %v4671_v59  ;;  %4325 = vmatprep.subr.mxu1 %v4671_v59 }
 0x62d   :  { %4288 = vmatmul.mubr.f32.vlgmr.msra.gmra.mxu1 %v5478_v28 }
 0x62e   :  { %4295 = vmatpush3.xpose.msra.mxu0 %v5324_v60  ;;  %4326 = vmatpush3.xpose.msra.mxu1 %v5276_v32  ;;  %v5788_v60 = vand.u32 4294901760, %v5465_v29 }
 0x62f   :  { %4296 = vmatprep.subr.mxu0 %v4671_v59  ;;  %4327 = vmatprep.subr.mxu1 %v4671_v59 }
 0x630   :  { %4357 = vmatprep.mubr.msk.f32.mxu1 %vm4672_vm6, %v4671_v59 }
 0x632   :  { %4297 = vmatpush3.xpose.msra.mxu0 %v5349_v26  ;;  %4328 = vmatpush3.xpose.msra.mxu1 %v5289_v42 }
 0x633   :  { %4298 = vmatprep.subr.mxu0 %v4671_v59  ;;  %4329 = vmatprep.subr.mxu1 %v4671_v59 }
 0x636   :  { %4299 = vmatpush3.xpose.msra.mxu0 %v5366_v47  ;;  %4330 = vmatpush3.xpose.msra.mxu1 %v5308_v50 }
 0x637   :  { %4300 = vmatprep.subr.mxu0 %v4671_v59  ;;  %4331 = vmatprep.subr.mxu1 %v4671_v59 }
 0x63a   :  { %4301 = vmatpush3.xpose.msra.mxu0 %v5382_v27  ;;  %4332 = vmatpush3.xpose.msra.mxu1 %v5329_v5 }
 0x63b   :  { %4302 = vmatprep.subr.mxu0 %v4671_v59  ;;  %4333 = vmatprep.subr.mxu1 %v4671_v59 }
 0x63e   :  { %4303 = vmatpush3.xpose.msra.mxu0 %v5391_v46  ;;  %4334 = vmatpush3.xpose.msra.mxu1 %v5351_v33 }
 0x63f   :  { %4304 = vmatprep.subr.mxu0 %v4671_v59  ;;  %4335 = vmatprep.subr.mxu1 %v4671_v59 }
 0x642   :  { %4305 = vmatpush3.xpose.msra.mxu0 %v5405_v11  ;;  %4336 = vmatpush3.xpose.msra.mxu1 %v5371_v54 }
 0x643   :  { %4306 = vmatprep.subr.mxu0 %v4671_v59  ;;  %4337 = vmatprep.subr.mxu1 %v4671_v59 }
 0x646   :  { %4307 = vmatpush3.xpose.msra.mxu0 %v5419_v14  ;;  %4338 = vmatpush3.xpose.msra.mxu1 %v5378_v8 }
 0x647   :  { %4308 = vmatprep.subr.mxu0 %v4671_v59  ;;  %4339 = vmatprep.subr.mxu1 %v4671_v59 }
 0x64a   :  { %4309 = vmatpush3.xpose.msra.mxu0 %v5428_v31  ;;  %4340 = vmatpush3.xpose.msra.mxu1 %v5397_v62 }
 0x64b   :  { %4310 = vmatprep.subr.mxu0 %v4671_v59  ;;  %4341 = vmatprep.subr.mxu1 %v4671_v59 }
 0x64e   :  { %4311 = vmatpush3.xpose.msra.mxu0 %v5442_v22  ;;  %4342 = vmatpush3.xpose.msra.mxu1 %v5410_v35 }
 0x64f   :  { %4312 = vmatprep.subr.mxu0 %v4671_v59  ;;  %4343 = vmatprep.subr.mxu1 %v4671_v59 }
 0x652   :  { %4313 = vmatpush3.xpose.msra.mxu0 %v5451_v55  ;;  %4344 = vmatpush3.xpose.msra.mxu1 %v5421_v7 }
 0x653   :  { %4314 = vmatprep.subr.mxu0 %v4671_v59  ;;  %4345 = vmatprep.subr.mxu1 %v4671_v59 }
 0x656   :  { %4315 = vmatpush3.xpose.msra.mxu0 %v5465_v29  ;;  %4346 = vmatpush3.xpose.msra.mxu1 %v5433_v45  ;;  %v1673_v21 = vpop.f32.mrf.mxu0 }
 0x657   :  { %v1674_v56 = vadd.f32 %v1673_v21, %v5524_v41  ;;  %4316 = vmatprep.subr.mxu0 %v4671_v59  ;;  %4347 = vmatprep.subr.mxu1 %v4671_v59 }
 0x658   :  { %v4072_v2 = vpop.f32.mrf.mxu0 }
 0x65a   :  { %4317 = vmatpush3.xpose.msra.mxu0 %v5482_v12  ;;  %4348 = vmatpush3.xpose.msra.mxu1 %v5438_v6 }
 0x65b   :  { %4318 = vmatprep.subr.mxu0 %v4671_v59  ;;  %4349 = vmatprep.subr.mxu1 %v4671_v59 }
 0x65e   :  { %4319 = vmatpush3.xpose.msra.mxu0 %v5495_v49  ;;  %4350 = vmatpush3.xpose.msra.mxu1 %v5457_v43  ;;  %v1762_v1 = vpop.f32.mrf.mxu1 }
 0x65f   :  { %v5596_v52 = vadd.f32 %v1762_v1, %v1674_v56  ;;  %4320 = vmatprep.subr.mxu0 %v4671_v59  ;;  %4351 = vmatprep.subr.mxu1 %v4671_v59 }
 0x660   :  { %v4107_v41 = vpop.f32.mrf.mxu1 }
 0x662   :  { %4321 = vmatpush3.xpose.msra.mxu0 %v5508_v36  ;;  %4352 = vmatpush3.xpose.msra.mxu1 %v5470_v53 }
 0x663   :  { %4353 = vmatprep.subr.mxu1 %v4671_v59  ;;  %4360 = vmatprep.subr.mxu0 %v4671_v59 }
 0x665   :  { %4323 = vmatmul.mubr.f32.vlgmr.msra.gmra.mxu0 %v5491_v30 }
 0x666   :  { %4354 = vmatpush3.xpose.msra.mxu1 %v5484_v18  ;;  %4361 = vmatpush3.xpose.msra.mxu0 %v2548_v51  ;;  %v3096_v51 = vsel %vm1972_vm7, %v5776_v24, 0  ;;  %v5789_v24 = vand.u32 4294901760, %v5482_v12 }
 0x667   :  { %4355 = vmatprep.subr.mxu1 %v4671_v59  ;;  %4362 = vmatprep.subr.mxu0 %v4671_v59 }
 0x668   :  { %4392 = vmatprep.mubr.msk.f32.mxu0 %vm4672_vm6, %v4671_v59 }
 0x66a   :  { %4356 = vmatpush3.xpose.msra.mxu1 %v5500_v23  ;;  %4363 = vmatpush3.xpose.msra.mxu0 %v2555_v58  ;;  %v5673_v58 = vand.u32 4294901760, %v3096_v51 }
 0x66b   :  { %4364 = vmatprep.subr.mxu0 %v4671_v59  ;;  %4395 = vmatprep.subr.mxu1 %v4671_v59 }
 0x66d   :  { %4358 = vmatmul.mubr.f32.vlgmr.msra.gmra.mxu1 %v2537_v25 }
 0x66e   :  { %4365 = vmatpush3.xpose.msra.mxu0 %v2562_v37  ;;  %4396 = vmatpush3.xpose.msra.mxu1 %v5276_v32  ;;  %v5783_v32 = vand.u32 4294901760, %v5405_v11 }
 0x66f   :  { %4366 = vmatprep.subr.mxu0 %v4671_v59  ;;  %4397 = vmatprep.subr.mxu1 %v4671_v59 }
 0x670   :  { %4427 = vmatprep.mubr.msk.f32.mxu1 %vm4672_vm6, %v4671_v59 }
 0x672   :  { %4367 = vmatpush3.xpose.msra.mxu0 %v2569_v57  ;;  %4398 = vmatpush3.xpose.msra.mxu1 %v5289_v42  ;;  %v5784_v42 = vand.u32 4294901760, %v5419_v14 }
 0x673   :  { %4368 = vmatprep.subr.mxu0 %v4671_v59  ;;  %4399 = vmatprep.subr.mxu1 %v4671_v59 }
 0x676   :  { %4369 = vmatpush3.xpose.msra.mxu0 %v2576_v34  ;;  %4400 = vmatpush3.xpose.msra.mxu1 %v5308_v50  ;;  %v5787_v50 = vand.u32 4294901760, %v5451_v55 }
 0x677   :  { %4370 = vmatprep.subr.mxu0 %v4671_v59  ;;  %4401 = vmatprep.subr.mxu1 %v4671_v59 }
 0x67a   :  { %4371 = vmatpush3.xpose.msra.mxu0 %v2583_v16  ;;  %4402 = vmatpush3.xpose.msra.mxu1 %v5329_v5 }
 0x67b   :  { %4372 = vmatprep.subr.mxu0 %v4671_v59  ;;  %4403 = vmatprep.subr.mxu1 %v4671_v59 }
 0x67e   :  { %4373 = vmatpush3.xpose.msra.mxu0 %v2590_v63  ;;  %4404 = vmatpush3.xpose.msra.mxu1 %v5351_v33  ;;  %v5681_v33 = vsub.f32 %v3096_v51, %v5673_v58 }
 0x67f   :  { %4374 = vmatprep.subr.mxu0 %v4671_v59  ;;  %4405 = vmatprep.subr.mxu1 %v4671_v59 }
 0x682   :  { %4375 = vmatpush3.xpose.msra.mxu0 %v5783_v32  ;;  %4406 = vmatpush3.xpose.msra.mxu1 %v5371_v54  ;;  %v3167_v54 = vand.u32 4294901760, %v5681_v33 }
 0x683   :  { %4376 = vmatprep.subr.mxu0 %v4671_v59  ;;  %4407 = vmatprep.subr.mxu1 %v4671_v59 }
 0x684   :  { %v3168_v46 = vsub.f32 %v5681_v33, %v3167_v54 }
 0x686   :  { %4377 = vmatpush3.xpose.msra.mxu0 %v5784_v42  ;;  %4408 = vmatpush3.xpose.msra.mxu1 %v5378_v8 }
 0x687   :  { %4378 = vmatprep.subr.mxu0 %v4671_v59  ;;  %4409 = vmatprep.subr.mxu1 %v4671_v59 }
 0x68a   :  { %4379 = vmatpush3.xpose.msra.mxu0 %v5785_v44  ;;  %4410 = vmatpush3.xpose.msra.mxu1 %v5397_v62 }
 0x68b   :  { %4380 = vmatprep.subr.mxu0 %v4671_v59  ;;  %4411 = vmatprep.subr.mxu1 %v4671_v59 }
 0x68e   :  { %4381 = vmatpush3.xpose.msra.mxu0 %v5786_v48  ;;  %4412 = vmatpush3.xpose.msra.mxu1 %v5410_v35  ;;  %v3169_v35 = vand.u32 4294901760, %v3168_v46 }
 0x68f   :  { %4382 = vmatprep.subr.mxu0 %v4671_v59  ;;  %4413 = vmatprep.subr.mxu1 %v4671_v59 }
 0x692   :  { %4383 = vmatpush3.xpose.msra.mxu0 %v5787_v50  ;;  %4414 = vmatpush3.xpose.msra.mxu1 %v5421_v7  ;;  %v5790_v7 = vmov 1.0  }
 0x693   :  { %4384 = vmatprep.subr.mxu0 %v4671_v59  ;;  %4415 = vmatprep.subr.mxu1 %v4671_v59 }
 0x696   :  { %4385 = vmatpush3.xpose.msra.mxu0 %v5788_v60  ;;  %4416 = vmatpush3.xpose.msra.mxu1 %v5433_v45  ;;  %v1881_v5 = vpop.f32.mrf.mxu0 }
 0x697   :  { %4386 = vmatprep.subr.mxu0 %v4671_v59  ;;  %4417 = vmatprep.subr.mxu1 %v4671_v59  ;;  %v1882_v55 = vadd.f32 %v1881_v5, %v5596_v52 }
 0x698   :  { %v4142_v26 = vpop.f32.mrf.mxu0 }
 0x69a   :  { %4387 = vmatpush3.xpose.msra.mxu0 %v5789_v24  ;;  %4418 = vmatpush3.xpose.msra.mxu1 %v5438_v6  ;;  %v2049_v37 = vpop.f32.mrf.mxu0 }
 0x69b   :  { %4388 = vmatprep.subr.mxu0 %v4671_v59  ;;  %4419 = vmatprep.subr.mxu1 %v4671_v59 }
 0x69c   :  { %v4184_v47 = vpop.f32.mrf.mxu0 }
 0x69e   :  { %4389 = vmatpush3.xpose.msra.mxu0 %v2646_v61  ;;  %4420 = vmatpush3.xpose.msra.mxu1 %v5457_v43  ;;  %v1968_v57 = vpop.f32.mrf.mxu1 }
 0x69f   :  { %4390 = vmatprep.subr.mxu0 %v4671_v59  ;;  %4421 = vmatprep.subr.mxu1 %v4671_v59  ;;  %v2206_v8 = vpop.f32.mrf.mxu0 }
 0x6a0   :  { %v4177_v27 = vpop.f32.mrf.mxu1 }
 0x6a1   :  { %v4198_v34 = vpop.f32.mrf.mxu0 }
 0x6a2   :  { %4391 = vmatpush3.xpose.msra.mxu0 %v2653_v20  ;;  %4422 = vmatpush3.xpose.msra.mxu1 %v5470_v53  ;;  %v1969_v20 = vadd.f32 %v1968_v57, %v1882_v55 }
 0x6a3   :  { %v2130_v62 = vpop.f32.mrf.mxu1  ;;  %4423 = vmatprep.subr.mxu1 %v4671_v59  ;;  %4430 = vmatprep.subr.mxu0 %v4671_v59 }
 0x6a4   :  { %v2131_v16 = vadd.f32 %v2130_v62, %v2049_v37 }
 0x6a5   :  { %4393 = vmatmul.mubr.f32.vlgmr.msra.gmra.mxu0 %v5478_v28  ;;  %v4191_v63 = vpop.f32.mrf.mxu1  ;;  %v2358_v11 = vpop.f32.mrf.mxu0 }
 0x6a6   :  { %v2207_v14 = vadd.f32 %v2206_v8, %v2131_v16  ;;  %4424 = vmatpush3.xpose.msra.mxu1 %v5484_v18  ;;  %4431 = vmatpush3.msk.msra.mxu0 %vm5213_vm8, %v5790_v7 }
 0x6a7   :  { %4425 = vmatprep.subr.mxu1 %v4671_v59  ;;  %v4212_v31 = vpop.f32.mrf.mxu0  ;;  %4432 = vmatprep.subr.mxu0 %v4671_v59 }
 0x6a8   :  { %v2281_v45 = vpop.f32.mrf.mxu1  ;;  %4433 = vmatpush3.msk.msra.mxu0 %vm5223_vm9, %v5790_v7  ;;  %4434 = vmatprep.mubr.msk.f32.mxu0 %vm4672_vm6, %v4671_v59 }
 0x6a9   :  { %v2282_v6 = vadd.f32 %v2281_v45, %v2207_v14  ;;  %4435 = vmatmul.mubr.f32.vlgmr.msra.gmra.mxu0 %v3169_v35  ;;  %4444 = vmatprep.subr.mxu0 %v4671_v59 }
 0x6aa   :  { %4426 = vmatpush3.xpose.msra.mxu1 %v5500_v23  ;;  %v4205_v22 = vpop.f32.mrf.mxu1  ;;  %4445 = vmatpush3.msra.mxu0 %v5239_v15 }
 0x6ab   :  { %v2359_v43 = vadd.f32 %v2358_v11, %v2282_v6  ;;  %4437 = vmatprep.subr.mxu1 %v4671_v59  ;;  %4446 = vmatprep.subr.mxu0 %v4671_v59 }
 0x6ac   :  { %v2431_v61 = vpop.f32.mrf.mxu1  ;;  %4447 = vmatpush3.msra.mxu0 %v5243_v4  ;;  %4448 = vmatprep.mubr.msk.f32.mxu0 %vm4672_vm6, %v4671_v59 }
 0x6ad   :  { %v2432_v29 = vadd.f32 %v2431_v61, %v2359_v43  ;;  %4428 = vmatmul.mubr.f32.vlgmr.msra.gmra.mxu1 %v5478_v28  ;;  %4449 = vmatmul.mubr.f32.vlgmr.msra.gmra.mxu0 %v5681_v33 }
 0x6ae   :  { %4438 = vmatpush3.msra.mxu1 %v5280_v38  ;;  %v4219_v15 = vpop.f32.mrf.mxu1  ;;  %4441 = vmatprep.mubr.msk.f32.mxu1 %vm4672_vm6, %v4671_v59 }
 0x6af   :  { %v2435_v23 = vsub.f32 %v1969_v20, %v2432_v29  ;;  %4439 = vmatprep.subr.mxu1 %v4671_v59  ;;  %4458 = vmatprep.subr.mxu0 %v4671_v59 }
 0x6b0   :  { %4440 = vmatpush3.msra.mxu1 %v5287_v39  ;;  %4459 = vmatpush3.msra.mxu0 %v5252_v9 }
 0x6b1   :  { %2436 = vst [vmem:[%s5765_s2] sm:$0x7] %v2435_v23  ;;  %4442 = vmatmul.mubr.f32.vlgmr.msra.gmra.mxu1 %v5673_v58  ;;  %4451 = vmatprep.subr.mxu1 %v4671_v59 }
 0x6b2   :  { %4452 = vmatpush3.msk.msra.mxu1 %vm5213_vm8, %v5790_v7  ;;  %4455 = vmatprep.mubr.msk.f32.mxu1 %vm4672_vm6, %v4671_v59 }
 0x6b3   :  { %4453 = vmatprep.subr.mxu1 %v4671_v59  ;;  %4460 = vmatprep.subr.mxu0 %v4671_v59 }
 0x6b4   :  { %4454 = vmatpush3.msk.msra.mxu1 %vm5223_vm9, %v5790_v7  ;;  %4461 = vmatpush3.msra.mxu0 %v5257_v17 }
 0x6b5   :  { %4456 = vmatmul.mubr.f32.vlgmr.msra.gmra.mxu1 %v3167_v54  ;;  %4462 = vmatprep.mubr.msk.f32.mxu0 %vm4672_vm6, %v4671_v59 }
 0x6b6   :  { %4465 = vmatprep.subr.mxu1 %v4671_v59  ;;  %4463 = vmatmul.mubr.f32.vlgmr.msra.gmra.mxu0 %v5673_v58 }
 0x6b7   :  { %4466 = vmatpush3.msk.msra.mxu1 %vm5213_vm8, %v5790_v7  ;;  %4469 = vmatprep.mubr.msk.f32.mxu1 %vm4672_vm6, %v4671_v59 }
 0x6b8   :  { %4467 = vmatprep.subr.mxu1 %v4671_v59 }
 0x6b9   :  { %4468 = vmatpush3.msk.msra.mxu1 %vm5223_vm9, %v5790_v7 }
 0x6ba   :  { %4470 = vmatmul.mubr.f32.vlgmr.msra.gmra.mxu1 %v5673_v58 }
 0x6e5   :  { %v2541_v4 = vpop.f32.mrf.mxu0 }
 0x6e7   :  { %v4254_v9 = vpop.f32.mrf.mxu0 }
 0x6ed   :  { %v2692_v17 = vpop.f32.mrf.mxu1 }
 0x6ee   :  { %v2693_v38 = vadd.f32 %v2692_v17, %v2541_v4 }
 0x6ef   :  { %v4289_v39 = vpop.f32.mrf.mxu1 }
 0x725   :  { %v2796_v53 = vpop.f32.mrf.mxu0 }
 0x726   :  { %v2797_v28 = vadd.f32 %v2796_v53, %v2693_v38 }
 0x727   :  { %v4324_v0 = vpop.f32.mrf.mxu0 }
 0x72d   :  { %v2885_v12 = vpop.f32.mrf.mxu1 }
 0x72e   :  { %v2886_v18 = vadd.f32 %v2885_v12, %v2797_v28 }
 0x72f   :  { %v4359_v30 = vpop.f32.mrf.mxu1 }
 0x765   :  { %v3004_v49 = vpop.f32.mrf.mxu0 }
 0x766   :  { %v3005_v48 = vadd.f32 %v3004_v49, %v2886_v18 }
 0x767   :  { %v4394_v25 = vpop.f32.mrf.mxu0 }
 0x769   :  { %v3171_v59 = vpop.f32.mrf.mxu0 }
 0x76b   :  { %v4436_v36 = vpop.f32.mrf.mxu0 }
 0x76d   :  { %v3091_v19 = vpop.f32.mrf.mxu1  ;;  %v3328_v3 = vpop.f32.mrf.mxu0 }
 0x76e   :  { %v3092_v51 = vadd.f32 %v3091_v19, %v3005_v48 }
 0x76f   :  { %v4429_v13 = vpop.f32.mrf.mxu1  ;;  %v4450_v40 = vpop.f32.mrf.mxu0 }
 0x771   :  { %v3252_v10 = vpop.f32.mrf.mxu1 }
 0x772   :  { %v3253_v21 = vadd.f32 %v3252_v10, %v3171_v59 }
 0x773   :  { %v4443_v56 = vpop.f32.mrf.mxu1 }
 0x774   :  { %v3329_v2 = vadd.f32 %v3328_v3, %v3253_v21 }
 0x775   :  { %v3403_v1 = vpop.f32.mrf.mxu1 }
 0x776   :  { %v3404_v52 = vadd.f32 %v3403_v1, %v3329_v2  ;;  %v3480_v41 = vpop.f32.mrf.mxu0 }
 0x777   :  { %v4457_v32 = vpop.f32.mrf.mxu1 }
 0x778   :  { %v3481_v42 = vadd.f32 %v3480_v41, %v3404_v52  ;;  %v4464_v44 = vpop.f32.mrf.mxu0 }
 0x77a   :  { %v3553_v50 = vpop.f32.mrf.mxu1 }
 0x77b   :  { %v3554_v58 = vadd.f32 %v3553_v50, %v3481_v42 }
 0x77c   :  { %v4471_v60 = vpop.f32.mrf.mxu1 }
 0x77d   :  { %v3557_v5 = vsub.f32 %v3092_v51, %v3554_v58 }
 0x77f   :  { %3631 = vst [vmem:[%s5765_s2 + $0x4] sm:$0x7] %v3557_v5 }

</bundles_post_ra>
